<compile_context>
chip_gen: v7x
topology: tpu7x:2x2x1
jax: 0.10.0
libtpu: 0.0.40
codegen_flags: <defaults>
</compile_context>

<pallas_src>
import jax
import jax.numpy as jnp
from jax.experimental import pallas as pl
from jax.experimental.pallas import tpu as pltpu

D = 28 * 28            # 784 logical feature dim (also the HBM column count)
H = 128                # padded width of every hidden layer
LAYER_DIMS = [D, 128, 64, 12, 3, 12, 64, 128, D]
N_LAYERS = len(LAYER_DIMS) - 1   # 8


def _autoencoder_kernel(x_ref, w_first_ref, w_mid_ref, w_last_ref, b_ref, out_ref):
    """Full encoder+decoder MLP on one (batch_tile, 784) slab, all in VMEM.

    w_first : (784, 128)     layer 0 weight
    w_mid   : (6, 128, 128)  layers 1..6, each zero-padded to 128x128
    w_last  : (128, 784)     layer 7 weight
    b       : (8, 784)       row l = bias of layer l, zero padded

    Zero padding of the middle layers is constructed so padded activation
    columns stay exactly zero through every hidden layer.
    """
    cdt = w_first_ref.dtype    # f32, or bf16 for the MXU fast path
    mdt = w_mid_ref.dtype

    # ---- layer 0: (tile, 784) @ (784, 128), ReLU
    h = jnp.dot(x_ref[...].astype(cdt), w_first_ref[...],
                preferred_element_type=jnp.float32)
    h = jnp.maximum(h + b_ref[0:1, :H], 0.0)

    # ---- layers 1..6: (tile, 128) @ (128, 128)  (zero-padded small layers)
    for l in range(1, 7):
        h = jnp.dot(h.astype(mdt), w_mid_ref[l - 1],
                    preferred_element_type=jnp.float32)
        h = h + b_ref[l:l + 1, :H]
        if l != 3:                 # no activation after the 3-dim bottleneck
            h = jnp.maximum(h, 0.0)

    # ---- layer 7: (tile, 128) @ (128, 784), Sigmoid
    h = jnp.dot(h.astype(cdt), w_last_ref[...],
                preferred_element_type=jnp.float32)
    h = h + b_ref[7:8, :]
    # single-transcendental sigmoid: sigmoid(x) == 0.5 * (tanh(x/2) + 1)
    out_ref[...] = (0.5 * (jnp.tanh(0.5 * h) + 1.0)).astype(out_ref.dtype)


def init_params(key):
    """PyTorch-style init U(-1/sqrt(fan_in), 1/sqrt(fan_in)).

    Weights returned already transposed to (in, out); biases as (1, out).
    """
    params = []
    for l in range(N_LAYERS):
        d_in, d_out = LAYER_DIMS[l], LAYER_DIMS[l + 1]
        key, kw, kb = jax.random.split(key, 3)
        bound = 1.0 / jnp.sqrt(jnp.float32(d_in))
        w = jax.random.uniform(kw, (d_in, d_out), jnp.float32, -bound, bound)
        b = jax.random.uniform(kb, (1, d_out), jnp.float32, -bound, bound)
        params.append(w)
        params.append(b)
    return params


def pack_params(params, use_bf16=True):
    """Pack 16 small parameter arrays into 4 lane-aligned blocks.

    Call ONCE at init (not per forward call) and reuse the packed blocks.
    """
    wdt = jnp.bfloat16 if use_bf16 else jnp.float32

    w_first = params[0].astype(wdt)                       # (784, 128)

    w_mid = jnp.zeros((6, H, H), jnp.float32)
    for l in range(1, 7):
        d_in, d_out = LAYER_DIMS[l], LAYER_DIMS[l + 1]
        w_mid = w_mid.at[l - 1, :d_in, :d_out].set(params[2 * l])
    w_mid = w_mid.astype(wdt)                             # (6, 128, 128)

    w_last = params[14].astype(wdt)                       # (128, 784)

    b = jnp.zeros((N_LAYERS, D), jnp.float32)
    for l in range(N_LAYERS):
        b = b.at[l, :LAYER_DIMS[l + 1]].set(params[2 * l + 1][0])

    return w_first, w_mid, w_last, b


def _choose_batch_tile(batch, requested):
    """Sublane-aligned tile; target >= 4 grid steps (>= 2 per v7x TensorCore)
    and prefer a tile that divides the batch (no row padding)."""
    requested = max(8, min(int(requested), 1024))
    requested = (requested // 8) * 8
    if batch <= 8:
        return 8
    target = -(-batch // 4)               # ceil(batch / 4)
    target = -(-target // 8) * 8          # round up to a multiple of 8
    tile = max(8, min(requested, target))
    if batch % tile != 0:
        for t in range(tile, 7, -8):      # largest multiple-of-8 divisor <= tile
            if batch % t == 0:
                return t
    return tile


def autoencoder_forward(x_nchw, packed_params, *, batch_tile=512,
                        out_dtype=jnp.float32, vmem_limit_bytes=None):
    """x_nchw: (B, 1, 28, 28).  Returns (B, 1, 28, 28) in out_dtype.

    packed_params: output of pack_params(params, use_bf16) -- pack once.
    batch_tile: rows per grid step.  512 is a good default everywhere;
    on v7x (64 MiB VMEM/core) keep it <= ~1024-1536 unless vmem_limit_bytes
    is raised as well.
    """
    w_first, w_mid, w_last, b = packed_params

    B = x_nchw.shape[0]
    x = x_nchw.reshape(B, D)              # no dtype cast, no column padding

    tile = _choose_batch_tile(B, batch_tile)
    pad_rows = (-B) % tile
    if pad_rows:                          # cheap row-only fallback pad
        x = jnp.pad(x, ((0, pad_rows), (0, 0)))
    Bp = B + pad_rows
    grid = (Bp // tile,)

    in_specs = [
        pl.BlockSpec((tile, D), lambda i: (i, 0)),        # x tile
        pl.BlockSpec((D, H), lambda i: (0, 0)),           # layer-0 weight
        pl.BlockSpec((6, H, H), lambda i: (0, 0, 0)),     # middle weights slab
        pl.BlockSpec((H, D), lambda i: (0, 0)),           # layer-7 weight
        pl.BlockSpec((N_LAYERS, D), lambda i: (0, 0)),    # bias slab
    ]
    out_spec = pl.BlockSpec((tile, D), lambda i: (i, 0))

    param_bytes = sum(int(a.size) * a.dtype.itemsize
                      for a in (w_first, w_mid, w_last, b))
    out_itemsize = jnp.dtype(out_dtype).itemsize
    cost = pl.CostEstimate(
        flops=2 * Bp * (D * H + 6 * H * H + H * D),
        transcendentals=Bp * D,                            # one tanh / element
        bytes_accessed=Bp * D * (x.dtype.itemsize + out_itemsize) + param_bytes,
    )

    compiler_kwargs = dict(dimension_semantics=("parallel",))
    if vmem_limit_bytes is not None:
        compiler_kwargs["vmem_limit_bytes"] = vmem_limit_bytes

    y = pl.pallas_call(
        _autoencoder_kernel,
        out_shape=jax.ShapeDtypeStruct((Bp, D), out_dtype),
        grid_spec=pltpu.PrefetchScalarGridSpec(
            num_scalar_prefetch=0,
            grid=grid,
            in_specs=in_specs,
            out_specs=out_spec,
        ),
        compiler_params=pltpu.CompilerParams(**compiler_kwargs),
        cost_estimate=cost,
    )(x, w_first, w_mid, w_last, b)

    if pad_rows:
        y = y[:B]
    return y.reshape(B, 1, 28, 28)


def _reference_forward(x_nchw, params):
    """Pure-JAX f32 reference matching the PyTorch module."""
    B = x_nchw.shape[0]
    h = x_nchw.reshape(B, D).astype(jnp.float32)
    for l in range(N_LAYERS):
        w = params[2 * l]
        b = params[2 * l + 1]
        h = h @ w + b
        if l == N_LAYERS - 1:
            h = jax.nn.sigmoid(h)
        elif l == 3:
            pass                     # bottleneck: no activation
        else:
            h = jnp.maximum(h, 0.0)
    return h.reshape(B, 1, 28, 28)


if __name__ == "__main__":
    key = jax.random.PRNGKey(0)
    key, kx, kp = jax.random.split(key, 3)

    batch = 64
    x = jax.random.uniform(kx, (batch, 1, 28, 28), jnp.float32)
    params = init_params(kp)

    ref = _reference_forward(x, params)

    # Exact f32 path (matches the PyTorch module numerics).
    packed_f32 = jax.block_until_ready(pack_params(params, use_bf16=False))
    out_f32 = jax.block_until_ready(autoencoder_forward(x, packed_f32))
    assert out_f32.shape == (batch, 1, 28, 28)
    assert jnp.allclose(out_f32, ref, atol=1e-4, rtol=1e-4)

    # bf16-operand MXU fast path (f32 accumulation) -- recommended on
    # v5e/v6e/v7x; ~1e-2 absolute error on the sigmoid output.
    packed_bf16 = jax.block_until_ready(pack_params(params, use_bf16=True))
    out_bf16 = jax.block_until_ready(autoencoder_forward(x, packed_bf16))
    assert out_bf16.shape == (batch, 1, 28, 28)
    assert jnp.allclose(out_bf16, ref, atol=3e-2, rtol=3e-2)

    print("KERNEL_OK")
</pallas_src>

<mosaic_0001>
module attributes {stable_mosaic.version = 11 : i64} {
  func.func @_autoencoder_kernel(%arg0: i32, %arg1: memref<16x784xf32, #tpu.memory_space<vmem>>, %arg2: memref<784x128xf32, #tpu.memory_space<vmem>>, %arg3: memref<6x128x128xf32, #tpu.memory_space<vmem>>, %arg4: memref<128x784xf32, #tpu.memory_space<vmem>>, %arg5: memref<8x784xf32, #tpu.memory_space<vmem>>, %arg6: memref<16x784xf32, #tpu.memory_space<vmem>>) attributes {dimension_semantics = [#tpu.dimension_semantics<parallel>], iteration_bounds = array<i64: 4>, scalar_prefetch = 0 : i64, scratch_operands = 0 : i64, tpu.core_type = #tpu.core_type<tc>, window_params = [{transform_indices = @transform_0, window_bounds = array<i64: 16, 784>}, {pipeline_mode = #tpu.pipeline_mode<synchronous>, transform_indices = @transform_1, window_bounds = array<i64: 784, 128>}, {pipeline_mode = #tpu.pipeline_mode<synchronous>, transform_indices = @transform_2, window_bounds = array<i64: 6, 128, 128>}, {pipeline_mode = #tpu.pipeline_mode<synchronous>, transform_indices = @transform_3, window_bounds = array<i64: 128, 784>}, {pipeline_mode = #tpu.pipeline_mode<synchronous>, transform_indices = @transform_4, window_bounds = array<i64: 8, 784>}, {transform_indices = @transform_5, window_bounds = array<i64: 16, 784>}]} {
    %c0 = arith.constant 0 : index
    %c0_0 = arith.constant 0 : index
    %0 = vector.load %arg1[%c0, %c0_0] : memref<16x784xf32, #tpu.memory_space<vmem>>, vector<16x784xf32>
    %c0_1 = arith.constant 0 : index
    %c0_2 = arith.constant 0 : index
    %1 = vector.load %arg2[%c0_1, %c0_2] : memref<784x128xf32, #tpu.memory_space<vmem>>, vector<784x128xf32>
    %cst = arith.constant dense<0.000000e+00> : vector<16x128xf32>
    %2 = tpu.matmul %0, %1, %cst {dimension_numbers = #tpu.dot_dimension_numbers<[1], [0], [0], [1], [0, 0, 1, 1], [], []>} : vector<16x784xf32>, vector<784x128xf32>, vector<16x128xf32> -> vector<16x128xf32>
    %c0_3 = arith.constant 0 : index
    %c0_4 = arith.constant 0 : index
    %3 = vector.load %arg5[%c0_3, %c0_4] : memref<8x784xf32, #tpu.memory_space<vmem>>, vector<1x128xf32>
    %4 = vector.broadcast %3 : vector<1x128xf32> to vector<16x128xf32>
    %5 = arith.addf %2, %4 : vector<16x128xf32>
    %cst_5 = arith.constant 0.000000e+00 : f32
    %6 = vector.broadcast %cst_5 : f32 to vector<16x128xf32>
    %7 = arith.maximumf %5, %6 : vector<16x128xf32>
    %c0_6 = arith.constant 0 : index
    %c0_7 = arith.constant 0 : index
    %c0_8 = arith.constant 0 : index
    %8 = vector.load %arg3[%c0_6, %c0_7, %c0_8] : memref<6x128x128xf32, #tpu.memory_space<vmem>>, vector<1x128x128xf32>
    %9 = vector.shape_cast %8 : vector<1x128x128xf32> to vector<128x128xf32>
    %cst_9 = arith.constant dense<0.000000e+00> : vector<16x128xf32>
    %10 = tpu.matmul %7, %9, %cst_9 {dimension_numbers = #tpu.dot_dimension_numbers<[1], [0], [0], [1], [0, 0, 1, 1], [], []>} : vector<16x128xf32>, vector<128x128xf32>, vector<16x128xf32> -> vector<16x128xf32>
    %c1 = arith.constant 1 : index
    %c0_10 = arith.constant 0 : index
    %11 = vector.load %arg5[%c1, %c0_10] : memref<8x784xf32, #tpu.memory_space<vmem>>, vector<1x128xf32>
    %12 = vector.broadcast %11 : vector<1x128xf32> to vector<16x128xf32>
    %13 = arith.addf %10, %12 : vector<16x128xf32>
    %cst_11 = arith.constant 0.000000e+00 : f32
    %14 = vector.broadcast %cst_11 : f32 to vector<16x128xf32>
    %15 = arith.maximumf %13, %14 : vector<16x128xf32>
    %c1_12 = arith.constant 1 : index
    %c0_13 = arith.constant 0 : index
    %c0_14 = arith.constant 0 : index
    %16 = vector.load %arg3[%c1_12, %c0_13, %c0_14] : memref<6x128x128xf32, #tpu.memory_space<vmem>>, vector<1x128x128xf32>
    %17 = vector.shape_cast %16 : vector<1x128x128xf32> to vector<128x128xf32>
    %cst_15 = arith.constant dense<0.000000e+00> : vector<16x128xf32>
    %18 = tpu.matmul %15, %17, %cst_15 {dimension_numbers = #tpu.dot_dimension_numbers<[1], [0], [0], [1], [0, 0, 1, 1], [], []>} : vector<16x128xf32>, vector<128x128xf32>, vector<16x128xf32> -> vector<16x128xf32>
    %c2 = arith.constant 2 : index
    %c0_16 = arith.constant 0 : index
    %19 = vector.load %arg5[%c2, %c0_16] : memref<8x784xf32, #tpu.memory_space<vmem>>, vector<1x128xf32>
    %20 = vector.broadcast %19 : vector<1x128xf32> to vector<16x128xf32>
    %21 = arith.addf %18, %20 : vector<16x128xf32>
    %cst_17 = arith.constant 0.000000e+00 : f32
    %22 = vector.broadcast %cst_17 : f32 to vector<16x128xf32>
    %23 = arith.maximumf %21, %22 : vector<16x128xf32>
    %c2_18 = arith.constant 2 : index
    %c0_19 = arith.constant 0 : index
    %c0_20 = arith.constant 0 : index
    %24 = vector.load %arg3[%c2_18, %c0_19, %c0_20] : memref<6x128x128xf32, #tpu.memory_space<vmem>>, vector<1x128x128xf32>
    %25 = vector.shape_cast %24 : vector<1x128x128xf32> to vector<128x128xf32>
    %cst_21 = arith.constant dense<0.000000e+00> : vector<16x128xf32>
    %26 = tpu.matmul %23, %25, %cst_21 {dimension_numbers = #tpu.dot_dimension_numbers<[1], [0], [0], [1], [0, 0, 1, 1], [], []>} : vector<16x128xf32>, vector<128x128xf32>, vector<16x128xf32> -> vector<16x128xf32>
    %c3 = arith.constant 3 : index
    %c0_22 = arith.constant 0 : index
    %27 = vector.load %arg5[%c3, %c0_22] : memref<8x784xf32, #tpu.memory_space<vmem>>, vector<1x128xf32>
    %28 = vector.broadcast %27 : vector<1x128xf32> to vector<16x128xf32>
    %29 = arith.addf %26, %28 : vector<16x128xf32>
    %c3_23 = arith.constant 3 : index
    %c0_24 = arith.constant 0 : index
    %c0_25 = arith.constant 0 : index
    %30 = vector.load %arg3[%c3_23, %c0_24, %c0_25] : memref<6x128x128xf32, #tpu.memory_space<vmem>>, vector<1x128x128xf32>
    %31 = vector.shape_cast %30 : vector<1x128x128xf32> to vector<128x128xf32>
    %cst_26 = arith.constant dense<0.000000e+00> : vector<16x128xf32>
    %32 = tpu.matmul %29, %31, %cst_26 {dimension_numbers = #tpu.dot_dimension_numbers<[1], [0], [0], [1], [0, 0, 1, 1], [], []>} : vector<16x128xf32>, vector<128x128xf32>, vector<16x128xf32> -> vector<16x128xf32>
    %c4 = arith.constant 4 : index
    %c0_27 = arith.constant 0 : index
    %33 = vector.load %arg5[%c4, %c0_27] : memref<8x784xf32, #tpu.memory_space<vmem>>, vector<1x128xf32>
    %34 = vector.broadcast %33 : vector<1x128xf32> to vector<16x128xf32>
    %35 = arith.addf %32, %34 : vector<16x128xf32>
    %cst_28 = arith.constant 0.000000e+00 : f32
    %36 = vector.broadcast %cst_28 : f32 to vector<16x128xf32>
    %37 = arith.maximumf %35, %36 : vector<16x128xf32>
    %c4_29 = arith.constant 4 : index
    %c0_30 = arith.constant 0 : index
    %c0_31 = arith.constant 0 : index
    %38 = vector.load %arg3[%c4_29, %c0_30, %c0_31] : memref<6x128x128xf32, #tpu.memory_space<vmem>>, vector<1x128x128xf32>
    %39 = vector.shape_cast %38 : vector<1x128x128xf32> to vector<128x128xf32>
    %cst_32 = arith.constant dense<0.000000e+00> : vector<16x128xf32>
    %40 = tpu.matmul %37, %39, %cst_32 {dimension_numbers = #tpu.dot_dimension_numbers<[1], [0], [0], [1], [0, 0, 1, 1], [], []>} : vector<16x128xf32>, vector<128x128xf32>, vector<16x128xf32> -> vector<16x128xf32>
    %c5 = arith.constant 5 : index
    %c0_33 = arith.constant 0 : index
    %41 = vector.load %arg5[%c5, %c0_33] : memref<8x784xf32, #tpu.memory_space<vmem>>, vector<1x128xf32>
    %42 = vector.broadcast %41 : vector<1x128xf32> to vector<16x128xf32>
    %43 = arith.addf %40, %42 : vector<16x128xf32>
    %cst_34 = arith.constant 0.000000e+00 : f32
    %44 = vector.broadcast %cst_34 : f32 to vector<16x128xf32>
    %45 = arith.maximumf %43, %44 : vector<16x128xf32>
    %c5_35 = arith.constant 5 : index
    %c0_36 = arith.constant 0 : index
    %c0_37 = arith.constant 0 : index
    %46 = vector.load %arg3[%c5_35, %c0_36, %c0_37] : memref<6x128x128xf32, #tpu.memory_space<vmem>>, vector<1x128x128xf32>
    %47 = vector.shape_cast %46 : vector<1x128x128xf32> to vector<128x128xf32>
    %cst_38 = arith.constant dense<0.000000e+00> : vector<16x128xf32>
    %48 = tpu.matmul %45, %47, %cst_38 {dimension_numbers = #tpu.dot_dimension_numbers<[1], [0], [0], [1], [0, 0, 1, 1], [], []>} : vector<16x128xf32>, vector<128x128xf32>, vector<16x128xf32> -> vector<16x128xf32>
    %c6 = arith.constant 6 : index
    %c0_39 = arith.constant 0 : index
    %49 = vector.load %arg5[%c6, %c0_39] : memref<8x784xf32, #tpu.memory_space<vmem>>, vector<1x128xf32>
    %50 = vector.broadcast %49 : vector<1x128xf32> to vector<16x128xf32>
    %51 = arith.addf %48, %50 : vector<16x128xf32>
    %cst_40 = arith.constant 0.000000e+00 : f32
    %52 = vector.broadcast %cst_40 : f32 to vector<16x128xf32>
    %53 = arith.maximumf %51, %52 : vector<16x128xf32>
    %c0_41 = arith.constant 0 : index
    %c0_42 = arith.constant 0 : index
    %54 = vector.load %arg4[%c0_41, %c0_42] : memref<128x784xf32, #tpu.memory_space<vmem>>, vector<128x784xf32>
    %cst_43 = arith.constant dense<0.000000e+00> : vector<16x784xf32>
    %55 = tpu.matmul %53, %54, %cst_43 {dimension_numbers = #tpu.dot_dimension_numbers<[1], [0], [0], [1], [0, 0, 1, 1], [], []>} : vector<16x128xf32>, vector<128x784xf32>, vector<16x784xf32> -> vector<16x784xf32>
    %c7 = arith.constant 7 : index
    %c0_44 = arith.constant 0 : index
    %56 = vector.load %arg5[%c7, %c0_44] : memref<8x784xf32, #tpu.memory_space<vmem>>, vector<1x784xf32>
    %57 = vector.broadcast %56 : vector<1x784xf32> to vector<16x784xf32>
    %58 = arith.addf %55, %57 : vector<16x784xf32>
    %cst_45 = arith.constant 5.000000e-01 : f32
    %59 = vector.broadcast %cst_45 : f32 to vector<16x784xf32>
    %60 = arith.mulf %59, %58 : vector<16x784xf32>
    %61 = math.tanh %60 : vector<16x784xf32>
    %cst_46 = arith.constant 1.000000e+00 : f32
    %62 = vector.broadcast %cst_46 : f32 to vector<16x784xf32>
    %63 = arith.addf %61, %62 : vector<16x784xf32>
    %cst_47 = arith.constant 5.000000e-01 : f32
    %64 = vector.broadcast %cst_47 : f32 to vector<16x784xf32>
    %65 = arith.mulf %64, %63 : vector<16x784xf32>
    %c0_48 = arith.constant 0 : index
    %c0_49 = arith.constant 0 : index
    %66 = vector.load %arg6[%c0_48, %c0_49] : memref<16x784xf32, #tpu.memory_space<vmem>>, vector<16x784xf32>
    tpu.vector_store %arg6[%c0_48, %c0_49], %65 {strides = array<i32>} : memref<16x784xf32, #tpu.memory_space<vmem>>, vector<16x784xf32>,
    return
  }
  func.func @transform_0(%arg0: i32) -> (i32, i32) {
    %c0_i32 = arith.constant 0 : i32
    %c0_i32_0 = arith.constant 0 : i32
    return %arg0, %c0_i32 : i32, i32
  }
  func.func @transform_1(%arg0: i32) -> (i32, i32) {
    %c0_i32 = arith.constant 0 : i32
    %c0_i32_0 = arith.constant 0 : i32
    %c0_i32_1 = arith.constant 0 : i32
    return %c0_i32, %c0_i32_0 : i32, i32
  }
  func.func @transform_2(%arg0: i32) -> (i32, i32, i32) {
    %c0_i32 = arith.constant 0 : i32
    %c0_i32_0 = arith.constant 0 : i32
    %c0_i32_1 = arith.constant 0 : i32
    %c0_i32_2 = arith.constant 0 : i32
    return %c0_i32, %c0_i32_0, %c0_i32_1 : i32, i32, i32
  }
  func.func @transform_3(%arg0: i32) -> (i32, i32) {
    %c0_i32 = arith.constant 0 : i32
    %c0_i32_0 = arith.constant 0 : i32
    %c0_i32_1 = arith.constant 0 : i32
    return %c0_i32, %c0_i32_0 : i32, i32
  }
  func.func @transform_4(%arg0: i32) -> (i32, i32) {
    %c0_i32 = arith.constant 0 : i32
    %c0_i32_0 = arith.constant 0 : i32
    %c0_i32_1 = arith.constant 0 : i32
    return %c0_i32, %c0_i32_0 : i32, i32
  }
  func.func @transform_5(%arg0: i32) -> (i32, i32) {
    %c0_i32 = arith.constant 0 : i32
    %c0_i32_0 = arith.constant 0 : i32
    return %arg0, %c0_i32 : i32, i32
  }
}

</mosaic_0001>

<bundles_post_ra>
// kernel: tpu_custom_call.1
= control target key start
LH: loop header
LB: loop body
LE: loop exit
PB: predicated region body
PF: predicated region fallthrough
CT: control target
= control target key end

     0   :  { %10 = vsyncpa [#allocation3], 0  ;;  %s4257_s0 = inlined_call_operand.hbm [shape: f32[64,784], index: 0, kind: input, shape index: {}]   ;;  %s4258_s1 = inlined_call_operand.vmem [shape: f32[784,128], index: 1, kind: input, shape index: {}]   ;;  %s4259_s2 = inlined_call_operand.vmem [shape: f32[6,128,128], index: 2, kind: input, shape index: {}]   ;;  %s4260_s3 = inlined_call_operand.vmem [shape: f32[128,784], index: 3, kind: input, shape index: {}]   ;;  %s4261_s4 = inlined_call_operand.vmem [shape: f32[8,784], index: 4, kind: input, shape index: {}]   ;;  %s4262_s5 = inlined_call_operand.hbm [shape: f32[64,784], index: 5, kind: output, shape index: {}]  }
   0x1   :  { %12 = vsyncpa [#allocation3 + $0x1], 0 }
   0x2   :  { %13 = vsyncpa [#allocation4], 0 }
   0x3   :  { %15 = vsyncpa [#allocation4 + $0x1], 0  ;;  %s3081_s18 = smov 0   ;;  %s3083_s19 = smov 0  }
   0x4   :  { %s3085_s20 = smov 0   ;;  %s3087_s21 = smov 0  }
   0x5 LB: > { %s3102_s22 = sadd.s32 4294967295, %s3042_s21   ;;  %s1851_s23 = sadd.s32 4294967294, %s3042_s21   ;;  %s3042_s21 = sphi %s3087_s21, %s4273_s21   ;;  %s3038_s20 = sphi %s3085_s20, %s4272_s20   ;;  %s3034_s19 = sphi %s3083_s19, %s4271_s19   ;;  %s3030_s18 = sphi %s3081_s18, %s4270_s18  }
   0x6   : > { %s3106_s24 = sadd.s32 1, %s3042_s21   ;;  %s28_s25 = sadd.s32 1, %s3038_s20 }
   0x7   : > { %s25_s26 = ssub.s32 %s3042_s21, %s3106_s24  ;;  %p35_p0 = scmp.ne.s32.totalorder %s3038_s20, %s3034_s19 }
   0x8   : > { %p26_p1 = scmp.eq.s32.totalorder %s25_s26, 0  ;;  %p36_p2 = scmp.eq.s32.totalorder %s3042_s21, 0 }
   0x9   : > { %p41_p3 = scmp.ne.s32.totalorder %s3034_s19, %s3030_s18  ;;  %p42_p4 = scmp.eq.s32.totalorder %s3102_s22, 0 }
   0xa   : > { %s3118_s27 = scalar_select %p26_p1, %s3038_s20, %s28_s25  }
   0xb   : > { %p37_p5 = por %p36_p2, %p35_p0  ;;  %p3120_p6 = por %p42_p4, %p41_p3 }
   0xc   : > { %p149_p7 = scmp.eq.s32.totalorder %s3102_s22, 3  ;;  %p155_p8 = scmp.eq.s32.totalorder %s1851_s23, 3 }
   0xd   : > { %p2879_p9 = scmp.lt.s32.totalorder %s3042_s21, 4  ;;  %s187_s6 = sand.u32 1, %s3038_s20  }
   0xe   : > { %p3126_p10 = por %p149_p7, %p35_p0  ;;  %p3130_p11 = por %p155_p8, %p41_p3 }
   0xf   : > { %s2864_s7 = smul.u32 1792, %s3042_s21  ;;  %p3141_p12 = pnand %p2879_p9, %p37_p5 }
  0x10   : > { %s4265_s29 = scalar_select %p3126_p10, 1, 0 }
  0x11   : > { %s4266_s30 = scalar_select %p3130_p11, 1, 0 }
  0x12   : > { %s2863_s8 = smul.u32 112, %s187_s6  ;;  %s3139_s11 = scalar_lea.hbm %s4257_s0, %s2864_s7 }
  0x13   : > { %s3147_s15 = scalar_lea.sflag [#allocation3], %s187_s6  ;;  %s2946_s16 = scalar_lea.hbm %s3139_s11, 1792 }
  0x14   : > { %s191_s13 = scalar_lea.vmem [#allocation2], %s2863_s8  ;;  %p2947_p13 = scmp.ne.s32.totalorder %s3139_s11, %s2946_s16 }
  0x15   : > { %s199_s14 = sshll.u32 %s191_s13, 4  ;;  %p2948_p0 = pneg %p3141_p12  ;;  %s3145_s14 = int_to_ptr.vmem [resolvable:$true] %s199_s14 }
  0x16   : > { %s2951_s25 = scalar_lea.hbm %s4257_s0, 7168  ;;  %p2952_p3 = scmp.lt.u32.totalorder %s3139_s11, %s4257_s0 }
  0x17   : > { %p2949_p1 = pnand %p2948_p0, %p2947_p13  ;;  %p2953_p4 = scmp.lt.u32.totalorder %s2951_s25, %s2946_s16 }
  0x18   : > { %p2955_p7 = scmp.lt.u32.totalorder %s2946_s16, %s3139_s11 }
  0x19   : > { %p2950_p2 = pneg %p2949_p1  ;;  %p2954_p5 = por %p2953_p4, %p2952_p3 }
  0x1b   : > { %p2956_p8 = por %p2955_p7, %p2954_p5 }
  0x1d   : > { %p2957_p9 = pnand %p2956_p8, %p2950_p2 }
  0x1f   : > { %2960 = shalt.err (!%p2957_p9)
}
  0x20   : > { %s2961_s6 = scalar_lea.vmem %s3145_s14, 1792  ;;  %s3044_s8 = smov [#allocation2]  }
  0x21   : > { %p2962_p13 = scmp.ne.s32.totalorder %s3145_s14, %s2961_s6  ;;  %s2966_s9 = sshll.u32 %s3044_s8, 4  ;;  %s2967_s9 = int_to_ptr.vmem [resolvable:$false] %s2966_s9 }
  0x22   : > { %s2968_s10 = scalar_lea.vmem %s2967_s9, 3584  ;;  %p2969_p10 = scmp.lt.s32.totalorder %s3145_s14, %s2967_s9 }
  0x23   : > { %p2964_p1 = pnand %p2962_p13, %p2948_p0  ;;  %p2970_p3 = scmp.lt.s32.totalorder %s2968_s10, %s2961_s6 }
  0x25   : > { %p2965_p11 = pneg %p2964_p1  ;;  %p2971_p4 = por %p2970_p3, %p2969_p10 }
  0x27   : > { %p2972_p5 = pnand %p2971_p4, %p2965_p11 }
  0x29   : > { %2975 = shalt.err (!%p2972_p5)
}
  0x2a   : > { %s3045_s13 = smov 896   ;;  %s3046_s16 = smov 56  }
  0x2b   : > { %2874 = dma.hbm_to_vmem [thread:$0]  (!%p3141_p12), %s3139_s11, 1792, %s3145_s14, %s3147_s15, %s3045_s13, %s3045_s13, %s3046_s16  }
  0x2c   : > { %p1857_p0 = scmp.ge.s32.totalorder %s3042_s21, 1  ;;  %p207_p2 = scmp.lt.s32.totalorder %s3042_s21, 5 }
  0x2e   : > { %p208_p7 = pnand %p1857_p0, %p207_p2 }
  0x2f   : > { %s3178_s17 = sand.u32 (!%p208_p7), 1, %s3034_s19  }
  0x30   : > { %211 = sbr.rel (%p208_p7) target bundleno = 1936 (0x790), region = 40  ;;  %s214_s25 = scalar_lea.sflag (!%p208_p7), [#allocation3], %s3178_s17 }
  0x31   : > { %s2865_s23 = smul.u32 (!%p208_p7), 112, %s3178_s17 }
  0x33   : > { %s3184_s26 = scalar_lea.vmem (!%p208_p7), [#allocation2], %s2865_s23 }
  0x37   : > { %3021 = dma.done.wait (%p3120_p6), %s214_s25, 1792  }
  0x38   : > { %3023 = vsyncadd (%p3120_p6), %s214_s25, 4294965504  ;;  %v276_v0 = vld [vmem:[%s4258_s1 + $0x80] sm:$0xff]  ;;  %v277_v1 = vld [vmem:[%s4258_s1 + $0x88] sm:$0xff]  ;;  %vm359_vm0 = vcmask 130048   ;;  %s4183_s12 = scalar_lea.vmem [#allocation5], %s2865_s23  ;;  %s2866_s23 = smul.u32 1792, %s3102_s22 }
  0x39   : > { %v260_v2 = vld [vmem:[%s4258_s1] sm:$0xff]  ;;  %v2443_v3 = vpack.c.bf16 %v277_v1, %v276_v0  ;;  %v261_v4 = vld [vmem:[%s4258_s1 + $0x8] sm:$0xff]  ;;  %v278_v11 = vld [vmem:[%s4258_s1 + $0x90] sm:$0xff]  ;;  %s1778_s14 = sshll.u32 %s4183_s12, 4  ;;  %s1764_s6 = scalar_lea.sflag [#allocation4], %s3178_s17  ;;  %s4212_s14 = int_to_ptr.vmem [resolvable:$true] %s1778_s14 }
  0x3a   : > { %v308_v5 = vld [vmem:[%s4258_s1 + $0x180] sm:$0xff]  ;;  %v309_v6 = vld [vmem:[%s4258_s1 + $0x188] sm:$0xff]  ;;  %v2445_v7 = vpack.c.bf16 %v261_v4, %v260_v2  ;;  %v279_v13 = vld [vmem:[%s4258_s1 + $0x98] sm:$0xff]  ;;  %s4208_s7 = scalar_lea.hbm %s4262_s5, %s2866_s23  ;;  %s2976_s8 = scalar_lea.vmem %s4212_s14, 1792 }
  0x3b   : > { %v2475_v8 = vpack.c.bf16 %v309_v6, %v308_v5  ;;  %v292_v9 = vld [vmem:[%s4258_s1 + $0x100] sm:$0xff]  ;;  %v293_v10 = vld [vmem:[%s4258_s1 + $0x108] sm:$0xff]  ;;  %2444 = vmatprep.subr.bf16.mxu0 %v2443_v3  ;;  %v262_v14 = vld [vmem:[%s4258_s1 + $0x10] sm:$0xff]  ;;  %v2447_v16 = vpack.c.bf16 %v279_v13, %v278_v11  ;;  %p2977_p6 = scmp.ne.s32.totalorder %s4212_s14, %s2976_s8  ;;  %p4268_p10 = scmp.ne.s32.totalorder %s4265_s29, 0 }
  0x3c   : > { %v2477_v12 = vpack.c.bf16 %v293_v10, %v292_v9  ;;  %v263_v15 = vld [vmem:[%s4258_s1 + $0x18] sm:$0xff]  ;;  %2446 = vmatpush3.bf16.msra.mxu0 %v2445_v7  ;;  %v310_v18 = vld [vmem:[%s4258_s1 + $0x190] sm:$0xff]  ;;  %v280_v23 = vld [vmem:[%s4258_s1 + $0xa0] sm:$0xff]  ;;  %s3048_s9 = smov [#allocation5]  }
  0x3d   : > { %2476 = vmatprep.subr.bf16.mxu1 %v2475_v8  ;;  %v2449_v17 = vpack.c.bf16 %v263_v15, %v262_v14  ;;  %v311_v19 = vld [vmem:[%s4258_s1 + $0x198] sm:$0xff]  ;;  %v294_v20 = vld [vmem:[%s4258_s1 + $0x110] sm:$0xff]  ;;  %v281_v24 = vld [vmem:[%s4258_s1 + $0xa8] sm:$0xff]  ;;  %2448 = vmatprep.subr.bf16.mxu0 %v2447_v16  ;;  %p2978_p11 = pnand %p2977_p6, %p4268_p10  ;;  %s2980_s10 = sshll.u32 %s3048_s9, 4  ;;  %s2981_s10 = int_to_ptr.vmem [resolvable:$false] %s2980_s10 }
  0x3e   : > { %2478 = vmatpush3.bf16.msra.mxu1 %v2477_v12  ;;  %v2479_v21 = vpack.c.bf16 %v311_v19, %v310_v18  ;;  %v295_v22 = vld [vmem:[%s4258_s1 + $0x118] sm:$0xff]  ;;  %v2451_v26 = vpack.c.bf16 %v281_v24, %v280_v23  ;;  %v264_v27 = vld [vmem:[%s4258_s1 + $0x20] sm:$0xff]  ;;  %v265_v28 = vld [vmem:[%s4258_s1 + $0x28] sm:$0xff]  ;;  %p2983_p8 = scmp.lt.s32.totalorder %s4212_s14, %s2981_s10 }
  0x3f   : > { %v2481_v25 = vpack.c.bf16 %v295_v22, %v294_v20  ;;  %v312_v29 = vld [vmem:[%s4258_s1 + $0x1a0] sm:$0xff]  ;;  %v313_v30 = vld [vmem:[%s4258_s1 + $0x1a8] sm:$0xff]  ;;  %v2453_v33 = vpack.c.bf16 %v265_v28, %v264_v27  ;;  %v282_v35 = vld [vmem:[%s4258_s1 + $0xb0] sm:$0xff]  ;;  %p2979_p12 = pneg %p2978_p11 }
  0x40   : > { %2480 = vmatprep.subr.bf16.mxu1 %v2479_v21  ;;  %v296_v31 = vld [vmem:[%s4258_s1 + $0x120] sm:$0xff]  ;;  %v297_v32 = vld [vmem:[%s4258_s1 + $0x128] sm:$0xff]  ;;  %2450 = vmatpush3.bf16.msra.mxu0 %v2449_v17  ;;  %v2483_v34 = vpack.c.bf16 %v313_v30, %v312_v29  ;;  %v283_v36 = vld [vmem:[%s4258_s1 + $0xb8] sm:$0xff] }
  0x41   : > { %v266_v37 = vld [vmem:[%s4258_s1 + $0x30] sm:$0xff]  ;;  %2452 = vmatprep.subr.bf16.mxu0 %v2451_v26  ;;  %v2485_v38 = vpack.c.bf16 %v297_v32, %v296_v31  ;;  %v2455_v39 = vpack.c.bf16 %v283_v36, %v282_v35  ;;  %v267_v40 = vld [vmem:[%s4258_s1 + $0x38] sm:$0xff]  ;;  %v284_v46 = vld [vmem:[%s4258_s1 + $0xc0] sm:$0xff] }
  0x42   : > { %2482 = vmatpush3.bf16.msra.mxu1 %v2481_v25  ;;  %v314_v41 = vld [vmem:[%s4258_s1 + $0x1b0] sm:$0xff]  ;;  %v315_v42 = vld [vmem:[%s4258_s1 + $0x1b8] sm:$0xff]  ;;  %v285_v47 = vld [vmem:[%s4258_s1 + $0xc8] sm:$0xff]  ;;  %v2457_v48 = vpack.c.bf16 %v267_v40, %v266_v37 }
  0x43   : > { %2484 = vmatprep.subr.bf16.mxu1 %v2483_v34  ;;  %v2487_v43 = vpack.c.bf16 %v315_v42, %v314_v41  ;;  %v298_v44 = vld [vmem:[%s4258_s1 + $0x130] sm:$0xff]  ;;  %v299_v45 = vld [vmem:[%s4258_s1 + $0x138] sm:$0xff]  ;;  %v316_v49 = vld [vmem:[%s4258_s1 + $0x1c0] sm:$0xff]  ;;  %v2459_v52 = vpack.c.bf16 %v285_v47, %v284_v46 }
  0x44   : > { %2454 = vmatpush3.bf16.msra.mxu0 %v2453_v33  ;;  %v317_v50 = vld [vmem:[%s4258_s1 + $0x1c8] sm:$0xff]  ;;  %v2489_v51 = vpack.c.bf16 %v299_v45, %v298_v44  ;;  %v268_v53 = vld [vmem:[%s4258_s1 + $0x40] sm:$0xff]  ;;  %v286_v58 = vld [vmem:[%s4258_s1 + $0xd0] sm:$0xff] }
  0x45   : > { %2456 = vmatprep.subr.bf16.mxu0 %v2455_v39  ;;  %v269_v54 = vld [vmem:[%s4258_s1 + $0x48] sm:$0xff]  ;;  %v300_v55 = vld [vmem:[%s4258_s1 + $0x140] sm:$0xff]  ;;  %v2491_v56 = vpack.c.bf16 %v317_v50, %v316_v49  ;;  %v287_v59 = vld [vmem:[%s4258_s1 + $0xd8] sm:$0xff] }
  0x46   : > { %2486 = vmatpush3.bf16.msra.mxu1 %v2485_v38  ;;  %v301_v57 = vld [vmem:[%s4258_s1 + $0x148] sm:$0xff]  ;;  %v318_v60 = vld [vmem:[%s4258_s1 + $0x1d0] sm:$0xff]  ;;  %v319_v61 = vld [vmem:[%s4258_s1 + $0x1d8] sm:$0xff]  ;;  %v2461_v62 = vpack.c.bf16 %v269_v54, %v268_v53  ;;  %v2463_v0 = vpack.c.bf16 %v287_v59, %v286_v58 }
  0x47   : > { %2488 = vmatprep.subr.bf16.mxu1 %v2487_v43  ;;  %v2493_v63 = vpack.c.bf16 %v301_v57, %v300_v55  ;;  %v270_v1 = vld [vmem:[%s4258_s1 + $0x50] sm:$0xff]  ;;  %v271_v2 = vld [vmem:[%s4258_s1 + $0x58] sm:$0xff]  ;;  %v2495_v4 = vpack.c.bf16 %v319_v61, %v318_v60  ;;  %v288_v6 = vld [vmem:[%s4258_s1 + $0xe0] sm:$0xff] }
  0x48   : > { %2458 = vmatpush3.bf16.msra.mxu0 %v2457_v48  ;;  %v302_v3 = vld [vmem:[%s4258_s1 + $0x150] sm:$0xff]  ;;  %v303_v5 = vld [vmem:[%s4258_s1 + $0x158] sm:$0xff]  ;;  %v289_v7 = vld [vmem:[%s4258_s1 + $0xe8] sm:$0xff]  ;;  %v2465_v10 = vpack.c.bf16 %v271_v2, %v270_v1 }
  0x49   : > { %2460 = vmatprep.subr.bf16.mxu0 %v2459_v52  ;;  %v320_v8 = vld [vmem:[%s4258_s1 + $0x1e0] sm:$0xff]  ;;  %v321_v9 = vld [vmem:[%s4258_s1 + $0x1e8] sm:$0xff]  ;;  %v2497_v13 = vpack.c.bf16 %v303_v5, %v302_v3  ;;  %v2467_v14 = vpack.c.bf16 %v289_v7, %v288_v6  ;;  %v290_v19 = vld [vmem:[%s4258_s1 + $0xf0] sm:$0xff] }
  0x4a   : > { %2490 = vmatpush3.bf16.msra.mxu1 %v2489_v51  ;;  %v272_v11 = vld [vmem:[%s4258_s1 + $0x60] sm:$0xff]  ;;  %v247_v12 = vld [vmem:[%s3184_s26 + $0x8] sm:$0xff]  ;;  %v2499_v18 = vpack.c.bf16 %v321_v9, %v320_v8  ;;  %v249_v21 = vld [vmem:[%s3184_s26 + $0x18] sm:$0xff] }
  0x4b   : > { %2492 = vmatprep.subr.bf16.mxu1 %v2491_v56  ;;  %v273_v15 = vld [vmem:[%s4258_s1 + $0x68] sm:$0xff]  ;;  %v304_v16 = vld [vmem:[%s4258_s1 + $0x160] sm:$0xff]  ;;  %v291_v20 = vld [vmem:[%s4258_s1 + $0xf8] sm:$0xff]  ;;  %430 = vmatprep.mubr.f32.mxu0 %v247_v12 }
  0x4c   : > { %2462 = vmatpush3.bf16.msra.mxu0 %v2461_v62  ;;  %v305_v17 = vld [vmem:[%s4258_s1 + $0x168] sm:$0xff]  ;;  %v322_v22 = vld [vmem:[%s4258_s1 + $0x1f0] sm:$0xff]  ;;  %v323_v23 = vld [vmem:[%s4258_s1 + $0x1f8] sm:$0xff]  ;;  %505 = vmatprep.mubr.f32.mxu1 %v249_v21  ;;  %v2469_v24 = vpack.c.bf16 %v273_v15, %v272_v11  ;;  %v2471_v26 = vpack.c.bf16 %v291_v20, %v290_v19 }
  0x4d   : > { %2464 = vmatprep.subr.bf16.mxu0 %v2463_v0  ;;  %v2501_v25 = vpack.c.bf16 %v305_v17, %v304_v16  ;;  %v274_v27 = vld [vmem:[%s4258_s1 + $0x70] sm:$0xff]  ;;  %v275_v28 = vld [vmem:[%s4258_s1 + $0x78] sm:$0xff]  ;;  %v2503_v30 = vpack.c.bf16 %v323_v23, %v322_v22  ;;  %v340_v32 = vld [vmem:[%s4258_s1 + $0x280] sm:$0xff] }
  0x4e   : > { %2494 = vmatpush3.bf16.msra.mxu1 %v2493_v63  ;;  %v306_v29 = vld [vmem:[%s4258_s1 + $0x170] sm:$0xff]  ;;  %v307_v31 = vld [vmem:[%s4258_s1 + $0x178] sm:$0xff]  ;;  %v341_v33 = vld [vmem:[%s4258_s1 + $0x288] sm:$0xff]  ;;  %v2473_v34 = vpack.c.bf16 %v275_v28, %v274_v27 }
  0x4f   : > { %2496 = vmatprep.subr.bf16.mxu1 %v2495_v4  ;;  %v2505_v35 = vpack.c.bf16 %v307_v31, %v306_v29  ;;  %v2507_v36 = vpack.c.bf16 %v341_v33, %v340_v32  ;;  %v324_v37 = vld [vmem:[%s4258_s1 + $0x200] sm:$0xff]  ;;  %v325_v38 = vld [vmem:[%s4258_s1 + $0x208] sm:$0xff]  ;;  %v342_v39 = vld [vmem:[%s4258_s1 + $0x290] sm:$0xff] }
  0x50   : > { %2466 = vmatpush3.bf16.msra.mxu0 %v2465_v10  ;;  %v343_v40 = vld [vmem:[%s4258_s1 + $0x298] sm:$0xff]  ;;  %v246_v41 = vld [vmem:[%s3184_s26] sm:$0xff]  ;;  %v2509_v42 = vpack.c.bf16 %v325_v38, %v324_v37  ;;  %v248_v43 = vld [vmem:[%s3184_s26 + $0x10] sm:$0xff] }
  0x51   : > { %2468 = vmatprep.subr.bf16.mxu0 %v2467_v14  ;;  %v2511_v44 = vpack.c.bf16 %v343_v40, %v342_v39  ;;  %v326_v45 = vld [vmem:[%s4258_s1 + $0x210] sm:$0xff]  ;;  %v327_v46 = vld [vmem:[%s4258_s1 + $0x218] sm:$0xff]  ;;  %v344_v47 = vld [vmem:[%s4258_s1 + $0x2a0] sm:$0xff] }
  0x52   : > { %2498 = vmatpush3.bf16.msra.mxu1 %v2497_v13  ;;  %v345_v48 = vld [vmem:[%s4258_s1 + $0x2a8] sm:$0xff]  ;;  %v254_v49 = vld [vmem:[%s3184_s26 + $0x40] sm:$0xff]  ;;  %v256_v51 = vld [vmem:[%s3184_s26 + $0x50] sm:$0xff]  ;;  %v2513_v53 = vpack.c.bf16 %v327_v46, %v326_v45 }
  0x53   : > { %2500 = vmatprep.subr.bf16.mxu1 %v2499_v18  ;;  %v356_v50 = vld [vmem:[%s4258_s1 + $0x300] sm:$0xff]  ;;  %v357_v52 = vld [vmem:[%s4258_s1 + $0x308] sm:$0xff]  ;;  %v2515_v56 = vpack.c.bf16 %v345_v48, %v344_v47  ;;  %v346_v60 = vld [vmem:[%s4258_s1 + $0x2b0] sm:$0xff] }
  0x54   : > { %2470 = vmatpush3.bf16.msra.mxu0 %v2469_v24  ;;  %v253_v54 = vld [vmem:[%s3184_s26 + $0x38] sm:$0xff]  ;;  %v2539_v55 = vpack.c.bf16 %v357_v52, %v356_v50  ;;  %v328_v57 = vld [vmem:[%s4258_s1 + $0x220] sm:$0xff]  ;;  %v255_v59 = vld [vmem:[%s3184_s26 + $0x48] sm:$0xff] }
  0x55   : > { %2472 = vmatprep.subr.bf16.mxu0 %v2471_v26  ;;  %v329_v58 = vld [vmem:[%s4258_s1 + $0x228] sm:$0xff]  ;;  %v347_v61 = vld [vmem:[%s4258_s1 + $0x2b8] sm:$0xff]  ;;  %v252_v63 = vld [vmem:[%s3184_s26 + $0x30] sm:$0xff] }
  0x56   : > { %2502 = vmatpush3.bf16.msra.mxu1 %v2501_v25  ;;  %v251_v62 = vld [vmem:[%s3184_s26 + $0x28] sm:$0xff]  ;;  %v2517_v0 = vpack.c.bf16 %v329_v58, %v328_v57  ;;  %v2519_v1 = vpack.c.bf16 %v347_v61, %v346_v60  ;;  %v330_v2 = vld [vmem:[%s4258_s1 + $0x230] sm:$0xff]  ;;  %v348_v5 = vld [vmem:[%s4258_s1 + $0x2c0] sm:$0xff] }
  0x57   : > { %2504 = vmatprep.subr.bf16.mxu1 %v2503_v30  ;;  %v331_v3 = vld [vmem:[%s4258_s1 + $0x238] sm:$0xff]  ;;  %v349_v6 = vld [vmem:[%s4258_s1 + $0x2c8] sm:$0xff]  ;;  %v332_v9 = vld [vmem:[%s4258_s1 + $0x240] sm:$0xff] }
  0x58   : > { %2474 = vmatpush3.bf16.msra.mxu0 %v2473_v34  ;;  %v259_v4 = vld [vmem:[%s3184_s26 + $0x68] sm:$0xff]  ;;  %v2521_v7 = vpack.c.bf16 %v331_v3, %v330_v2  ;;  %v2523_v8 = vpack.c.bf16 %v349_v6, %v348_v5  ;;  %v350_v11 = vld [vmem:[%s4258_s1 + $0x2d0] sm:$0xff]  ;;  %v352_v17 = vld [vmem:[%s4258_s1 + $0x2e0] sm:$0xff] }
  0x59   : > { %2508 = vmatprep.subr.bf16.mxu0 %v2507_v36  ;;  %v333_v10 = vld [vmem:[%s4258_s1 + $0x248] sm:$0xff]  ;;  %v351_v12 = vld [vmem:[%s4258_s1 + $0x2d8] sm:$0xff]  ;;  %v334_v15 = vld [vmem:[%s4258_s1 + $0x250] sm:$0xff] }
  0x5a   : > { %2506 = vmatpush3.bf16.msra.mxu1 %v2505_v35  ;;  %v2525_v13 = vpack.c.bf16 %v333_v10, %v332_v9  ;;  %v2527_v14 = vpack.c.bf16 %v351_v12, %v350_v11  ;;  %v335_v16 = vld [vmem:[%s4258_s1 + $0x258] sm:$0xff]  ;;  %v353_v18 = vld [vmem:[%s4258_s1 + $0x2e8] sm:$0xff]  ;;  %v336_v21 = vld [vmem:[%s4258_s1 + $0x260] sm:$0xff] }
  0x5b   : > { %431 = vmatmul.mubr.f32.vlgmr.msra.gmra.mrb[0].mxu0 %v246_v41  ;;  %2540 = vmatprep.subr.bf16.mxu1 %v2539_v55  ;;  %v2529_v19 = vpack.c.bf16 %v335_v16, %v334_v15  ;;  %v2531_v20 = vpack.c.bf16 %v353_v18, %v352_v17  ;;  %v337_v22 = vld [vmem:[%s4258_s1 + $0x268] sm:$0xff]  ;;  %v354_v23 = vld [vmem:[%s4258_s1 + $0x2f0] sm:$0xff]  ;;  %v355_v24 = vld [vmem:[%s4258_s1 + $0x2f8] sm:$0xff] }
  0x5c   : > { %2510 = vmatpush3.bf16.msra.mxu0 %v2509_v42  ;;  %435 = vmatprep.mubr.f32.mxu0 %v254_v49  ;;  %v2533_v25 = vpack.c.bf16 %v337_v22, %v336_v21  ;;  %v2535_v26 = vpack.c.bf16 %v355_v24, %v354_v23  ;;  %v338_v27 = vld [vmem:[%s4258_s1 + $0x270] sm:$0xff]  ;;  %v339_v28 = vld [vmem:[%s4258_s1 + $0x278] sm:$0xff]  ;;  %v668_v33 = vld [vmem:[%s4259_s2] sm:$0xff] }
  0x5d   : > { %506 = vmatmul.mubr.f32.vlgmr.msra.gmra.mrb[0].mxu1 %v248_v43  ;;  %2512 = vmatprep.subr.bf16.mxu0 %v2511_v44  ;;  %v2537_v29 = vpack.c.bf16 %v339_v28, %v338_v27  ;;  %v250_v30 = vld [vmem:[%s3184_s26 + $0x20] sm:$0xff]  ;;  %v257_v32 = vld [vmem:[%s3184_s26 + $0x58] sm:$0xff] }
  0x5e   : > { %510 = vmatprep.mubr.f32.mxu1 %v256_v51  ;;  %2542 = vmatpush3.bf16.msra.mxu1 %v2539_v55  ;;  %v258_v31 = vld [vmem:[%s3184_s26 + $0x60] sm:$0xff]  ;;  %v669_v34 = vld [vmem:[%s4259_s2 + $0x8] sm:$0xff]  ;;  %v671_v37 = vld [vmem:[%s4259_s2 + $0x18] sm:$0xff]  ;;  %s2982_s26 = scalar_lea.vmem %s2981_s10, 3584 }
  0x5f   : > { %436 = vmatmul.mubr.f32.gmra.mrb[2].mxu0 %v253_v54  ;;  %v670_v35 = vld [vmem:[%s4259_s2 + $0x10] sm:$0xff]  ;;  %v2543_v36 = vpack.c.bf16 %v669_v34, %v668_v33  ;;  %v672_v39 = vld [vmem:[%s4259_s2 + $0x20] sm:$0xff]  ;;  %v673_v40 = vld [vmem:[%s4259_s2 + $0x28] sm:$0xff]  ;;  %p2984_p9 = scmp.lt.s32.totalorder %s2982_s26, %s2976_s8 }
  0x60   : > { %2514 = vmatpush3.bf16.msra.mxu0 %v2513_v53  ;;  %580 = vmatprep.mubr.f32.mxu0 %v251_v62  ;;  %v2547_v38 = vpack.c.bf16 %v671_v37, %v670_v35  ;;  %v2551_v41 = vpack.c.bf16 %v673_v40, %v672_v39  ;;  %v674_v42 = vld [vmem:[%s4259_s2 + $0x30] sm:$0xff]  ;;  %v675_v43 = vld [vmem:[%s4259_s2 + $0x38] sm:$0xff]  ;;  %v676_v45 = vld [vmem:[%s4259_s2 + $0x40] sm:$0xff] }
  0x61   : > { %511 = vmatmul.mubr.f32.gmra.mrb[2].mxu1 %v255_v59  ;;  %2516 = vmatprep.subr.bf16.mxu0 %v2515_v56  ;;  %v2555_v44 = vpack.c.bf16 %v675_v43, %v674_v42  ;;  %v677_v46 = vld [vmem:[%s4259_s2 + $0x48] sm:$0xff]  ;;  %v678_v48 = vld [vmem:[%s4259_s2 + $0x50] sm:$0xff]  ;;  %v679_v49 = vld [vmem:[%s4259_s2 + $0x58] sm:$0xff]  ;;  %p2985_p13 = por %p2984_p9, %p2983_p8 }
  0x62   : > { %2195 = vmatprep.mubr.msk.f32.mxu1 %vm359_vm0, %v252_v63  ;;  %2544 = vmatprep.subr.bf16.mxu1 %v2543_v36  ;;  %v2559_v47 = vpack.c.bf16 %v677_v46, %v676_v45  ;;  %v2563_v50 = vpack.c.bf16 %v679_v49, %v678_v48  ;;  %v680_v51 = vld [vmem:[%s4259_s2 + $0x60] sm:$0xff]  ;;  %v681_v52 = vld [vmem:[%s4259_s2 + $0x68] sm:$0xff]  ;;  %v682_v54 = vld [vmem:[%s4259_s2 + $0x70] sm:$0xff] }
  0x63   : > { %v2567_v53 = vpack.c.bf16 %v681_v52, %v680_v51  ;;  %v683_v55 = vld [vmem:[%s4259_s2 + $0x78] sm:$0xff]  ;;  %v1860_v57 = vld [vmem:[%s4259_s2 + $0x80] sm:$0xff]  ;;  %v1861_v58 = vld [vmem:[%s4259_s2 + $0x88] sm:$0xff]  ;;  %p2986_p1 = pnand %p2985_p13, %p2979_p12 }
  0x64   : > { %2518 = vmatpush3.bf16.msra.mxu0 %v2517_v0  ;;  %v2571_v56 = vpack.c.bf16 %v683_v55, %v682_v54  ;;  %v1862_v59 = vld [vmem:[%s4259_s2 + $0x90] sm:$0xff]  ;;  %v2575_v60 = vpack.c.bf16 %v1861_v58, %v1860_v57  ;;  %v1863_v61 = vld [vmem:[%s4259_s2 + $0x98] sm:$0xff]  ;;  %v1864_v63 = vld [vmem:[%s4259_s2 + $0xa0] sm:$0xff] }
  0x65   : > { %2196 = vmatmul.mubr.msk.f32.vlgmr.msra.gmra.mrb[4].mxu1 %vm359_vm0, %v259_v4  ;;  %2520 = vmatprep.subr.bf16.mxu0 %v2519_v1  ;;  %v2579_v62 = vpack.c.bf16 %v1863_v61, %v1862_v59  ;;  %v1865_v0 = vld [vmem:[%s4259_s2 + $0xa8] sm:$0xff]  ;;  %v1866_v2 = vld [vmem:[%s4259_s2 + $0xb0] sm:$0xff]  ;;  %v1867_v3 = vld [vmem:[%s4259_s2 + $0xb8] sm:$0xff] }
  0x66   : > { %2546 = vmatpush3.bf16.msra.mxu1 %v2543_v36  ;;  %v2583_v1 = vpack.c.bf16 %v1865_v0, %v1864_v63  ;;  %v2587_v4 = vpack.c.bf16 %v1867_v3, %v1866_v2  ;;  %v1868_v5 = vld [vmem:[%s4259_s2 + $0xc0] sm:$0xff]  ;;  %v1869_v6 = vld [vmem:[%s4259_s2 + $0xc8] sm:$0xff]  ;;  %v1871_v9 = vld [vmem:[%s4259_s2 + $0xd8] sm:$0xff] }
  0x67   : > { %2548 = vmatprep.subr.bf16.mxu1 %v2547_v38  ;;  %v1872_v11 = vld [vmem:[%s4259_s2 + $0xe0] sm:$0xff]  ;;  %v1873_v12 = vld [vmem:[%s4259_s2 + $0xe8] sm:$0xff]  ;;  %v1874_v45 = vld [vmem:[%s4259_s2 + $0xf0] sm:$0xff] }
  0x68   : > { %2522 = vmatpush3.bf16.msra.mxu0 %v2521_v7  ;;  %v2591_v7 = vpack.c.bf16 %v1869_v6, %v1868_v5  ;;  %v358_v15 = vld [vmem:[%s4261_s4] ss:$0 sm:$0xff]  ;;  %v1875_v46 = vld [vmem:[%s4259_s2 + $0xf8] sm:$0xff]  ;;  %v1877_v49 = vld [vmem:[%s4259_s2 + $0x108] sm:$0xff] }
  0x69   : > { %2524 = vmatprep.subr.bf16.mxu0 %v2523_v8  ;;  %v1870_v8 = vld [vmem:[%s4259_s2 + $0xd0] sm:$0xff]  ;;  %v1876_v48 = vld [vmem:[%s4259_s2 + $0x100] sm:$0xff]  ;;  %v1879_v52 = vld [vmem:[%s4259_s2 + $0x118] sm:$0xff] }
  0x6a   : > { %2550 = vmatpush3.bf16.msra.mxu1 %v2547_v38  ;;  %v2595_v10 = vpack.c.bf16 %v1871_v9, %v1870_v8  ;;  %v2607_v51 = vpack.c.bf16 %v1877_v49, %v1876_v48  ;;  %v1880_v54 = vld [vmem:[%s4259_s2 + $0x120] sm:$0xff]  ;;  %v1881_v55 = vld [vmem:[%s4259_s2 + $0x128] sm:$0xff]  ;;  %v1882_v57 = vld [vmem:[%s4259_s2 + $0x130] sm:$0xff] }
  0x6b   : > { %2552 = vmatprep.subr.bf16.mxu1 %v2551_v41  ;;  %v1883_v58 = vld [vmem:[%s4259_s2 + $0x138] sm:$0xff]  ;;  %v1885_v61 = vld [vmem:[%s4259_s2 + $0x148] sm:$0xff]  ;;  %v1886_v63 = vld [vmem:[%s4259_s2 + $0x150] sm:$0xff] }
  0x6c   : > { %2526 = vmatpush3.bf16.msra.mxu0 %v2525_v13  ;;  %v2599_v13 = vpack.c.bf16 %v1873_v12, %v1872_v11  ;;  %v2619_v59 = vpack.c.bf16 %v1883_v58, %v1882_v57  ;;  %v1887_v0 = vld [vmem:[%s4259_s2 + $0x158] sm:$0xff]  ;;  %v1888_v2 = vld [vmem:[%s4259_s2 + $0x160] sm:$0xff]  ;;  %v1889_v3 = vld [vmem:[%s4259_s2 + $0x168] sm:$0xff] }
  0x6d   : > { %2528 = vmatprep.subr.bf16.mxu0 %v2527_v14  ;;  %v684_v5 = vld [vmem:[%s4261_s4 + $0x1] ss:$0 sm:$0xff]  ;;  %v1890_v12 = vld [vmem:[%s4259_s2 + $0x170] sm:$0xff] }
  0x6e   : > { %2554 = vmatpush3.bf16.msra.mxu1 %v2551_v41  ;;  %v1910_v48 = vld [vmem:[%s4259_s2 + $0x210] sm:$0xff]  ;;  %v1916_v58 = vld [vmem:[%s4259_s2 + $0x240] sm:$0xff] }
  0x6f   : > { %2556 = vmatprep.subr.bf16.mxu1 %v2555_v44 }
  0x70   : > { %2530 = vmatpush3.bf16.msra.mxu0 %v2529_v19 }
  0x71   : > { %2532 = vmatprep.subr.bf16.mxu0 %v2531_v20 }
  0x72   : > { %2558 = vmatpush3.bf16.msra.mxu1 %v2555_v44 }
  0x73   : > { %2560 = vmatprep.subr.bf16.mxu1 %v2559_v47 }
  0x74   : > { %2534 = vmatpush3.bf16.msra.mxu0 %v2533_v25 }
  0x75   : > { %2536 = vmatprep.subr.bf16.mxu0 %v2535_v26 }
  0x76   : > { %2562 = vmatpush3.bf16.msra.mxu1 %v2559_v47  ;;  %v2603_v47 = vpack.c.bf16 %v1875_v46, %v1874_v45  ;;  %v1908_v46 = vld [vmem:[%s4259_s2 + $0x200] sm:$0xff] }
  0x77   : > { %2564 = vmatprep.subr.bf16.mxu1 %v2563_v50 }
  0x78   : > { %2538 = vmatpush3.bf16.msra.mxu0 %v2537_v29 }
  0x79   : > { %2576 = vmatprep.subr.bf16.mxu0 %v2575_v60 }
  0x7a   : > { %2566 = vmatpush3.bf16.msra.mxu1 %v2563_v50  ;;  %v1878_v50 = vld [vmem:[%s4259_s2 + $0x110] sm:$0xff] }
  0x7b   : > { %581 = vmatmul.mubr.f32.vlgmr.msra.gmra.mrb[4].mxu0 %v250_v30  ;;  %2568 = vmatprep.subr.bf16.mxu1 %v2567_v53 }
  0x7c   : > { %585 = vmatprep.mubr.f32.mxu0 %v258_v31  ;;  %2578 = vmatpush3.bf16.msra.mxu0 %v2575_v60  ;;  %v1884_v60 = vld [vmem:[%s4259_s2 + $0x140] sm:$0xff] }
  0x7d   : > { %2580 = vmatprep.subr.bf16.mxu0 %v2579_v62 }
  0x7e   : > { %2570 = vmatpush3.bf16.msra.mxu1 %v2567_v53  ;;  %v2611_v53 = vpack.c.bf16 %v1879_v52, %v1878_v50  ;;  %v1911_v50 = vld [vmem:[%s4259_s2 + $0x218] sm:$0xff]  ;;  %v1912_v52 = vld [vmem:[%s4259_s2 + $0x220] sm:$0xff] }
  0x7f   : > { %586 = vmatmul.mubr.f32.gmra.mrb[6].mxu0 %v257_v32  ;;  %2572 = vmatprep.subr.bf16.mxu1 %v2571_v56 }
  0x80   : > { %2582 = vmatpush3.bf16.msra.mxu0 %v2579_v62  ;;  %v2623_v62 = vpack.c.bf16 %v1885_v61, %v1884_v60  ;;  %v1918_v61 = vld [vmem:[%s4259_s2 + $0x250] sm:$0xff] }
  0x81   : > { %2584 = vmatprep.subr.bf16.mxu0 %v2583_v1 }
  0x82   : > { %2574 = vmatpush3.bf16.msra.mxu1 %v2571_v56  ;;  %v2615_v56 = vpack.c.bf16 %v1881_v55, %v1880_v54  ;;  %v1914_v55 = vld [vmem:[%s4259_s2 + $0x230] sm:$0xff] }
  0x83   : > { %2608 = vmatprep.subr.bf16.mxu1 %v2607_v51 }
  0x84   : > { %2586 = vmatpush3.bf16.msra.mxu0 %v2583_v1  ;;  %v2627_v1 = vpack.c.bf16 %v1887_v0, %v1886_v63  ;;  %v1920_v0 = vld [vmem:[%s4259_s2 + $0x260] sm:$0xff] }
  0x85   : > { %2588 = vmatprep.subr.bf16.mxu0 %v2587_v4 }
  0x88   : > { %2590 = vmatpush3.bf16.msra.mxu0 %v2587_v4  ;;  %v2631_v4 = vpack.c.bf16 %v1889_v3, %v1888_v2  ;;  %v874_v3 = vld [vmem:[%s4261_s4 + $0x3] ss:$0 sm:$0xff] }
  0x89   : > { %2592 = vmatprep.subr.bf16.mxu0 %v2591_v7 }
  0x8c   : > { %2594 = vmatpush3.bf16.msra.mxu0 %v2591_v7 }
  0x8d   : > { %2596 = vmatprep.subr.bf16.mxu0 %v2595_v10 }
  0x90   : > { %2598 = vmatpush3.bf16.msra.mxu0 %v2595_v10 }
  0x91   : > { %2600 = vmatprep.subr.bf16.mxu0 %v2599_v13 }
  0x94   : > { %2602 = vmatpush3.bf16.msra.mxu0 %v2599_v13  ;;  %v1891_v13 = vld [vmem:[%s4259_s2 + $0x178] sm:$0xff] }
  0x95   : > { %2604 = vmatprep.subr.bf16.mxu0 %v2603_v47 }
  0x98   : > { %2606 = vmatpush3.bf16.msra.mxu0 %v2603_v47  ;;  %v1909_v47 = vld [vmem:[%s4259_s2 + $0x208] sm:$0xff] }
  0x99   : > { %v2671_v49 = vpack.c.bf16 %v1909_v47, %v1908_v46  ;;  %v1245_v46 = vld [vmem:[%s4260_s3 + $0x50] sm:$0xff]  ;;  %v1235_v47 = vld [vmem:[%s4260_s3] sm:$0xff] }
 0x12e   : > { %v1979_v14 = vpop.f32.mrb[0].mxu0 }
 0x12f   : > { %v1980_v16 = vpop.f32.mrb[1].mxu0 }
 0x130   : > { %v2017_v17 = vpop.f32.mrb[0].mxu1  ;;  %v1981_v18 = vadd.f32 %v1980_v16, %v1979_v14  ;;  %v2635_v14 = vpack.c.bf16 %v1891_v13, %v1890_v12  ;;  %v1893_v16 = vld [vmem:[%s4259_s2 + $0x188] sm:$0xff]  ;;  %v1926_v13 = vld [vmem:[%s4259_s2 + $0x290] sm:$0xff] }
 0x131   : > { %v2018_v19 = vpop.f32.mrb[1].mxu1  ;;  %v1925_v12 = vld [vmem:[%s4259_s2 + $0x288] sm:$0xff] }
 0x132   : > { %v2019_v20 = vadd.f32 %v2018_v19, %v2017_v17  ;;  %v433_v21 = vadd.f32 %v1981_v18, %v358_v15  ;;  %v1982_v22 = vpop.f32.mrb[2].mxu0  ;;  %v1894_v17 = vld [vmem:[%s4259_s2 + $0x190] sm:$0xff]  ;;  %v1895_v19 = vld [vmem:[%s4259_s2 + $0x198] sm:$0xff] }
 0x133   : > { %v1983_v23 = vpop.f32.mrb[3].mxu0 }
 0x134   : > { %v2020_v24 = vpop.f32.mrb[2].mxu1  ;;  %v508_v25 = vadd.f32 %v2019_v20, %v433_v21  ;;  %v1984_v26 = vadd.f32 %v1983_v23, %v1982_v22  ;;  %v2643_v20 = vpack.c.bf16 %v1895_v19, %v1894_v17  ;;  %v1896_v21 = vld [vmem:[%s4259_s2 + $0x1a0] sm:$0xff]  ;;  %v1897_v22 = vld [vmem:[%s4259_s2 + $0x1a8] sm:$0xff] }
 0x135   : > { %v2021_v27 = vpop.f32.mrb[3].mxu1  ;;  %v2647_v23 = vpack.c.bf16 %v1897_v22, %v1896_v21  ;;  %v1928_v17 = vld [vmem:[%s4259_s2 + $0x2a0] sm:$0xff]  ;;  %v1931_v21 = vld [vmem:[%s4259_s2 + $0x2b8] sm:$0xff] }
 0x136   : > { %v2022_v28 = vadd.f32 %v2021_v27, %v2020_v24  ;;  %v438_v29 = vadd.f32 %v1984_v26, %v358_v15  ;;  %v1892_v15 = vld [vmem:[%s4259_s2 + $0x180] sm:$0xff]  ;;  %v1898_v24 = vld [vmem:[%s4259_s2 + $0x1b0] sm:$0xff] }
 0x137   : > { %v2639_v18 = vpack.c.bf16 %v1893_v16, %v1892_v15  ;;  %v1900_v27 = vld [vmem:[%s4259_s2 + $0x1c0] sm:$0xff]  ;;  %v1927_v15 = vld [vmem:[%s4259_s2 + $0x298] sm:$0xff] }
 0x138   : > { %v2197_v30 = vpop.f32.mrb[4].mxu1  ;;  %v513_v31 = vadd.f32 %v2022_v28, %v438_v29  ;;  %v1901_v28 = vld [vmem:[%s4259_s2 + $0x1c8] sm:$0xff]  ;;  %v2707_v16 = vpack.c.bf16 %v1927_v15, %v1926_v13 }
 0x139   : > { %v657_v32 = vpop.f32.mrb[5].mxu1  ;;  %2640 = vmatprep.subr.bf16.mxu0 %v2639_v18  ;;  %v2655_v29 = vpack.c.bf16 %v1901_v28, %v1900_v27  ;;  %v1935_v27 = vld [vmem:[%s4259_s2 + $0x2d8] sm:$0xff]  ;;  %v1312_v15 = vld [vmem:[%s4260_s3 + $0x268] sm:$0xff] }
 0x14e   : > { %v2055_v33 = vpop.f32.mrb[4].mxu0 }
 0x14f   : > { %v2056_v34 = vpop.f32.mrb[5].mxu0 }
 0x150   : > { %v2057_v35 = vadd.f32 %v2056_v34, %v2055_v33  ;;  %v1904_v33 = vld [vmem:[%s4259_s2 + $0x1e0] sm:$0xff]  ;;  %v1905_v34 = vld [vmem:[%s4259_s2 + $0x1e8] sm:$0xff] }
 0x152   : > { %v2058_v36 = vpop.f32.mrb[6].mxu0  ;;  %v583_v37 = vadd.f32 %v2057_v35, %v508_v25  ;;  %v1899_v25 = vld [vmem:[%s4259_s2 + $0x1b8] sm:$0xff]  ;;  %v2663_v35 = vpack.c.bf16 %v1905_v34, %v1904_v33 }
 0x153   : > { %v2059_v38 = vpop.f32.mrb[7].mxu0  ;;  %v2651_v26 = vpack.c.bf16 %v1899_v25, %v1898_v24  ;;  %v1933_v24 = vld [vmem:[%s4259_s2 + $0x2c8] sm:$0xff] }
 0x154   : > { %v2060_v39 = vadd.f32 %v2059_v38, %v2058_v36  ;;  %v658_v40 = vadd.f32 %v657_v32, %v583_v37  ;;  %v779_v36 = vld [vmem:[%s4261_s4 + $0x2] ss:$0 sm:$0xff] }
 0x156   : > { %v588_v41 = vadd.f32 %v2060_v39, %v513_v31  ;;  %v666_v42 = vmax.f32 %v658_v40, 0.0  ;;  %v1903_v31 = vld [vmem:[%s4259_s2 + $0x1d8] sm:$0xff] }
 0x158   : > { %v663_v43 = vadd.f32 %v2197_v30, %v588_v41  ;;  %2230 = vmatprep.mubr.f32.mxu1 %v666_v42  ;;  %v1902_v30 = vld [vmem:[%s4259_s2 + $0x1d0] sm:$0xff] }
 0x159   : > { %v2659_v32 = vpack.c.bf16 %v1903_v31, %v1902_v30  ;;  %v1937_v30 = vld [vmem:[%s4259_s2 + $0x2e8] sm:$0xff] }
 0x15a   : > { %v667_v44 = vmax.f32 %v663_v43, 0.0  ;;  %v1906_v43 = vld [vmem:[%s4259_s2 + $0x1f0] sm:$0xff] }
 0x15c   : > { %2231 = vmatmul.mubr.f32.vlgmr.msra.gmra.mrb[6].mxu1 %v667_v44  ;;  %v1907_v44 = vld [vmem:[%s4259_s2 + $0x1f8] sm:$0xff] }
 0x15d   : > { %2610 = vmatpush3.bf16.msra.mxu1 %v2607_v51  ;;  %v2667_v45 = vpack.c.bf16 %v1907_v44, %v1906_v43  ;;  %v2675_v51 = vpack.c.bf16 %v1911_v50, %v1910_v48  ;;  %v1243_v43 = vld [vmem:[%s4260_s3 + $0x40] sm:$0xff]  ;;  %v1238_v44 = vld [vmem:[%s4260_s3 + $0x18] sm:$0xff] }
 0x15e   : > { %2612 = vmatprep.subr.bf16.mxu1 %v2611_v53  ;;  %v1242_v48 = vld [vmem:[%s4260_s3 + $0x38] sm:$0xff] }
 0x15f   : > { %v2737_v50 = vpack.c.bf16 %v1242_v48, %v1235_v47  ;;  %v1279_v48 = vld [vmem:[%s4260_s3 + $0x160] sm:$0xff] }
 0x161   : > { %2614 = vmatpush3.bf16.msra.mxu1 %v2611_v53  ;;  %v1913_v53 = vld [vmem:[%s4259_s2 + $0x228] sm:$0xff] }
 0x162   : > { %2616 = vmatprep.subr.bf16.mxu1 %v2615_v56  ;;  %v2679_v54 = vpack.c.bf16 %v1913_v53, %v1912_v52  ;;  %v1257_v52 = vld [vmem:[%s4260_s3 + $0xb0] sm:$0xff] }
 0x165   : > { %2618 = vmatpush3.bf16.msra.mxu1 %v2615_v56  ;;  %v1915_v56 = vld [vmem:[%s4259_s2 + $0x238] sm:$0xff] }
 0x166   : > { %2620 = vmatprep.subr.bf16.mxu1 %v2619_v59  ;;  %v2683_v57 = vpack.c.bf16 %v1915_v56, %v1914_v55  ;;  %v1256_v55 = vld [vmem:[%s4260_s3 + $0xa8] sm:$0xff] }
 0x169   : > { %2622 = vmatpush3.bf16.msra.mxu1 %v2619_v59  ;;  %v1917_v59 = vld [vmem:[%s4259_s2 + $0x248] sm:$0xff] }
 0x16a   : > { %2624 = vmatprep.subr.bf16.mxu1 %v2623_v62  ;;  %v2687_v60 = vpack.c.bf16 %v1917_v59, %v1916_v58  ;;  %v1271_v58 = vld [vmem:[%s4260_s3 + $0x120] sm:$0xff] }
 0x16d   : > { %2626 = vmatpush3.bf16.msra.mxu1 %v2623_v62  ;;  %v1919_v62 = vld [vmem:[%s4259_s2 + $0x258] sm:$0xff] }
 0x16e   : > { %2628 = vmatprep.subr.bf16.mxu1 %v2627_v1  ;;  %v2691_v63 = vpack.c.bf16 %v1919_v62, %v1918_v61  ;;  %v1270_v61 = vld [vmem:[%s4260_s3 + $0x118] sm:$0xff] }
 0x171   : > { %2630 = vmatpush3.bf16.msra.mxu1 %v2627_v1  ;;  %v1921_v1 = vld [vmem:[%s4259_s2 + $0x268] sm:$0xff] }
 0x172   : > { %2632 = vmatprep.subr.bf16.mxu1 %v2631_v4  ;;  %v2695_v2 = vpack.c.bf16 %v1921_v1, %v1920_v0  ;;  %v1285_v0 = vld [vmem:[%s4260_s3 + $0x190] sm:$0xff] }
 0x175   : > { %2634 = vmatpush3.bf16.msra.mxu1 %v2631_v4 }
 0x176   : > { %2636 = vmatprep.subr.bf16.mxu1 %v2635_v14 }
 0x179   : > { %2638 = vmatpush3.bf16.msra.mxu1 %v2635_v14 }
 0x17a   : > { %2672 = vmatprep.subr.bf16.mxu1 %v2671_v49 }
 0x22f   : > { %v2232_v6 = vpop.f32.mrb[6].mxu1 }
 0x230   : > { %v757_v7 = vadd.f32 %v2232_v6, %v684_v5  ;;  %v751_v8 = vpop.f32.mrb[7].mxu1 }
 0x231   : > { %v752_v9 = vadd.f32 %v751_v8, %v684_v5  ;;  %v1922_v8 = vld [vmem:[%s4259_s2 + $0x270] sm:$0xff] }
 0x232   : > { %v761_v11 = vmax.f32 %v757_v7, 0.0 }
 0x233   : > { %v760_v10 = vmax.f32 %v752_v9, 0.0  ;;  %v1923_v9 = vld [vmem:[%s4259_s2 + $0x278] sm:$0xff] }
 0x235   : > { %2265 = vmatprep.mubr.f32.mxu0 %v760_v10  ;;  %v2699_v10 = vpack.c.bf16 %v1923_v9, %v1922_v8  ;;  %v1291_v8 = vld [vmem:[%s4260_s3 + $0x1c0] sm:$0xff]  ;;  %v1298_v9 = vld [vmem:[%s4260_s3 + $0x1f8] sm:$0xff] }
 0x236   : > { %2266 = vmatmul.mubr.f32.vlgmr.msra.gmra.mrb[8].mxu0 %v761_v11  ;;  %v1924_v11 = vld [vmem:[%s4259_s2 + $0x280] sm:$0xff] }
 0x237   : > { %2642 = vmatpush3.bf16.msra.mxu0 %v2639_v18  ;;  %v2703_v14 = vpack.c.bf16 %v1925_v12, %v1924_v11  ;;  %v1929_v18 = vld [vmem:[%s4259_s2 + $0x2a8] sm:$0xff]  ;;  %v1306_v11 = vld [vmem:[%s4260_s3 + $0x238] sm:$0xff]  ;;  %v1313_v12 = vld [vmem:[%s4260_s3 + $0x270] sm:$0xff] }
 0x238   : > { %2644 = vmatprep.subr.bf16.mxu0 %v2643_v20  ;;  %v2711_v19 = vpack.c.bf16 %v1929_v18, %v1928_v17  ;;  %v2755_v13 = vpack.c.bf16 %v1313_v12, %v1306_v11  ;;  %v1320_v17 = vld [vmem:[%s4260_s3 + $0x2a8] sm:$0xff]  ;;  %v1327_v18 = vld [vmem:[%s4260_s3 + $0x2e0] sm:$0xff] }
 0x239   : > { %v1340_v11 = vld [vmem:[%s4260_s3 + $0x348] sm:$0xff] }
 0x23b   : > { %2646 = vmatpush3.bf16.msra.mxu0 %v2643_v20  ;;  %v1930_v20 = vld [vmem:[%s4259_s2 + $0x2b0] sm:$0xff] }
 0x23c   : > { %2648 = vmatprep.subr.bf16.mxu0 %v2647_v23  ;;  %v2715_v22 = vpack.c.bf16 %v1931_v21, %v1930_v20  ;;  %v1319_v20 = vld [vmem:[%s4260_s3 + $0x2a0] sm:$0xff]  ;;  %v1326_v21 = vld [vmem:[%s4260_s3 + $0x2d8] sm:$0xff] }
 0x23f   : > { %2650 = vmatpush3.bf16.msra.mxu0 %v2647_v23  ;;  %v1932_v23 = vld [vmem:[%s4259_s2 + $0x2c0] sm:$0xff] }
 0x240   : > { %2652 = vmatprep.subr.bf16.mxu0 %v2651_v26  ;;  %v2719_v25 = vpack.c.bf16 %v1933_v24, %v1932_v23  ;;  %v1062_v23 = vld [vmem:[%s4261_s4 + $0x5] ss:$0 sm:$0xff] }
 0x243   : > { %2654 = vmatpush3.bf16.msra.mxu0 %v2651_v26  ;;  %v1934_v26 = vld [vmem:[%s4259_s2 + $0x2d0] sm:$0xff] }
 0x244   : > { %2656 = vmatprep.subr.bf16.mxu0 %v2655_v29  ;;  %v2723_v28 = vpack.c.bf16 %v1935_v27, %v1934_v26  ;;  %v1237_v27 = vld [vmem:[%s4260_s3 + $0x10] sm:$0xff] }
 0x247   : > { %2658 = vmatpush3.bf16.msra.mxu0 %v2655_v29  ;;  %v1936_v29 = vld [vmem:[%s4259_s2 + $0x2e0] sm:$0xff] }
 0x248   : > { %2660 = vmatprep.subr.bf16.mxu0 %v2659_v32  ;;  %v2727_v31 = vpack.c.bf16 %v1937_v30, %v1936_v29  ;;  %v1252_v30 = vld [vmem:[%s4260_s3 + $0x88] sm:$0xff] }
 0x24b   : > { %2662 = vmatpush3.bf16.msra.mxu0 %v2659_v32  ;;  %v967_v32 = vld [vmem:[%s4261_s4 + $0x4] ss:$0 sm:$0xff] }
 0x24c   : > { %2664 = vmatprep.subr.bf16.mxu0 %v2663_v35 }
 0x24f   : > { %2666 = vmatpush3.bf16.msra.mxu0 %v2663_v35 }
 0x250   : > { %2668 = vmatprep.subr.bf16.mxu0 %v2667_v45 }
 0x253   : > { %2670 = vmatpush3.bf16.msra.mxu0 %v2667_v45 }
 0x254   : > { %2704 = vmatprep.subr.bf16.mxu0 %v2703_v14 }
 0x309   : > { %v2267_v37 = vpop.f32.mrb[8].mxu0 }
 0x30a   : > { %v852_v38 = vadd.f32 %v2267_v37, %v779_v36  ;;  %v846_v39 = vpop.f32.mrb[9].mxu0 }
 0x30b   : > { %v847_v40 = vadd.f32 %v846_v39, %v779_v36  ;;  %v1938_v39 = vld [vmem:[%s4259_s2 + $0x2f0] sm:$0xff] }
 0x30c   : > { %v856_v42 = vmax.f32 %v852_v38, 0.0 }
 0x30d   : > { %v855_v41 = vmax.f32 %v847_v40, 0.0  ;;  %v1939_v40 = vld [vmem:[%s4259_s2 + $0x2f8] sm:$0xff] }
 0x30f   : > { %2300 = vmatprep.mubr.f32.mxu1 %v855_v41  ;;  %v2731_v41 = vpack.c.bf16 %v1939_v40, %v1938_v39  ;;  %v1273_v39 = vld [vmem:[%s4260_s3 + $0x130] sm:$0xff] }
 0x310   : > { %2301 = vmatmul.mubr.f32.vlgmr.msra.gmra.mrb[8].mxu1 %v856_v42  ;;  %v1236_v42 = vld [vmem:[%s4260_s3 + $0x8] sm:$0xff] }
 0x311   : > { %2674 = vmatpush3.bf16.msra.mxu1 %v2671_v49  ;;  %v2735_v45 = vpack.c.bf16 %v1243_v43, %v1236_v42  ;;  %v2767_v49 = vpack.c.bf16 %v1245_v46, %v1238_v44  ;;  %v1265_v42 = vld [vmem:[%s4260_s3 + $0xf0] sm:$0xff]  ;;  %v1272_v43 = vld [vmem:[%s4260_s3 + $0x128] sm:$0xff] }
 0x312   : > { %2676 = vmatprep.subr.bf16.mxu1 %v2675_v51  ;;  %v1280_v44 = vld [vmem:[%s4260_s3 + $0x168] sm:$0xff]  ;;  %v2777_v46 = vpack.c.bf16 %v1272_v43, %v1265_v42  ;;  %v1275_v42 = vld [vmem:[%s4260_s3 + $0x140] sm:$0xff]  ;;  %v1269_v43 = vld [vmem:[%s4260_s3 + $0x110] sm:$0xff] }
 0x315   : > { %2678 = vmatpush3.bf16.msra.mxu1 %v2675_v51  ;;  %v1250_v51 = vld [vmem:[%s4260_s3 + $0x78] sm:$0xff] }
 0x316   : > { %2680 = vmatprep.subr.bf16.mxu1 %v2679_v54  ;;  %v2739_v53 = vpack.c.bf16 %v1257_v52, %v1250_v51  ;;  %v1301_v51 = vld [vmem:[%s4260_s3 + $0x210] sm:$0xff] }
 0x319   : > { %2682 = vmatpush3.bf16.msra.mxu1 %v2679_v54  ;;  %v1249_v54 = vld [vmem:[%s4260_s3 + $0x70] sm:$0xff] }
 0x31a   : > { %2684 = vmatprep.subr.bf16.mxu1 %v2683_v57  ;;  %v2741_v56 = vpack.c.bf16 %v1256_v55, %v1249_v54  ;;  %v1293_v54 = vld [vmem:[%s4260_s3 + $0x1d0] sm:$0xff]  ;;  %v1300_v55 = vld [vmem:[%s4260_s3 + $0x208] sm:$0xff] }
 0x31d   : > { %2686 = vmatpush3.bf16.msra.mxu1 %v2683_v57  ;;  %v1264_v57 = vld [vmem:[%s4260_s3 + $0xe8] sm:$0xff] }
 0x31e   : > { %2688 = vmatprep.subr.bf16.mxu1 %v2687_v60  ;;  %v2743_v59 = vpack.c.bf16 %v1271_v58, %v1264_v57  ;;  %v1315_v57 = vld [vmem:[%s4260_s3 + $0x280] sm:$0xff]  ;;  %v2785_v58 = vpack.c.bf16 %v1300_v55, %v1293_v54  ;;  %v1290_v54 = vld [vmem:[%s4260_s3 + $0x1b8] sm:$0xff] }
 0x321   : > { %2690 = vmatpush3.bf16.msra.mxu1 %v2687_v60  ;;  %v1263_v60 = vld [vmem:[%s4260_s3 + $0xe0] sm:$0xff] }
 0x322   : > { %2692 = vmatprep.subr.bf16.mxu1 %v2691_v63  ;;  %v2745_v62 = vpack.c.bf16 %v1270_v61, %v1263_v60  ;;  %v1307_v60 = vld [vmem:[%s4260_s3 + $0x240] sm:$0xff]  ;;  %v1314_v61 = vld [vmem:[%s4260_s3 + $0x278] sm:$0xff] }
 0x325   : > { %2694 = vmatpush3.bf16.msra.mxu1 %v2691_v63  ;;  %v1278_v63 = vld [vmem:[%s4260_s3 + $0x158] sm:$0xff] }
 0x326   : > { %2696 = vmatprep.subr.bf16.mxu1 %v2695_v2  ;;  %v2747_v1 = vpack.c.bf16 %v1285_v0, %v1278_v63  ;;  %v1329_v63 = vld [vmem:[%s4260_s3 + $0x2f0] sm:$0xff]  ;;  %v2789_v0 = vpack.c.bf16 %v1314_v61, %v1307_v60  ;;  %v1296_v60 = vld [vmem:[%s4260_s3 + $0x1e8] sm:$0xff]  ;;  %v1303_v61 = vld [vmem:[%s4260_s3 + $0x220] sm:$0xff] }
 0x329   : > { %2698 = vmatpush3.bf16.msra.mxu1 %v2695_v2  ;;  %v1277_v2 = vld [vmem:[%s4260_s3 + $0x150] sm:$0xff] }
 0x32a   : > { %2700 = vmatprep.subr.bf16.mxu1 %v2699_v10 }
 0x32d   : > { %2702 = vmatpush3.bf16.msra.mxu1 %v2699_v10  ;;  %v2753_v10 = vpack.c.bf16 %v1298_v9, %v1291_v8  ;;  %v1343_v9 = vld [vmem:[%s4260_s3 + $0x360] sm:$0xff] }
 0x32e   : > { %2736 = vmatprep.subr.bf16.mxu1 %v2735_v45  ;;  %v1287_v45 = vld [vmem:[%s4260_s3 + $0x1a0] sm:$0xff] }
 0x32f   : > { %v2779_v47 = vpack.c.bf16 %v1287_v45, %v1280_v44  ;;  %v1276_v44 = vld [vmem:[%s4260_s3 + $0x148] sm:$0xff] }
 0x3e3   : > { %v2302_v4 = vpop.f32.mrb[8].mxu1 }
 0x3e4   : > { %v941_v5 = vpop.f32.mrb[9].mxu1  ;;  %v947_v7 = vadd.f32 %v2302_v4, %v874_v3 }
 0x3e5   : > { %v942_v6 = vadd.f32 %v941_v5, %v874_v3  ;;  %v1284_v3 = vld [vmem:[%s4260_s3 + $0x188] sm:$0xff] }
 0x3e6   : > { %v2749_v4 = vpack.c.bf16 %v1284_v3, %v1277_v2  ;;  %v1292_v5 = vld [vmem:[%s4260_s3 + $0x1c8] sm:$0xff]  ;;  %v1321_v2 = vld [vmem:[%s4260_s3 + $0x2b0] sm:$0xff] }
 0x3e7   : > { %2335 = vmatprep.mubr.f32.mxu0 %v942_v6  ;;  %v1299_v6 = vld [vmem:[%s4260_s3 + $0x200] sm:$0xff]  ;;  %v1328_v3 = vld [vmem:[%s4260_s3 + $0x2e8] sm:$0xff] }
 0x3e8   : > { %2336 = vmatmul.mubr.f32.vlgmr.msra.gmra.mrb[10].mxu0 %v947_v7  ;;  %v2751_v7 = vpack.c.bf16 %v1299_v6, %v1292_v5  ;;  %v1334_v5 = vld [vmem:[%s4260_s3 + $0x318] sm:$0xff]  ;;  %v1341_v6 = vld [vmem:[%s4260_s3 + $0x350] sm:$0xff] }
 0x3e9   : > { %2706 = vmatpush3.bf16.msra.mxu0 %v2703_v14  ;;  %v1305_v14 = vld [vmem:[%s4260_s3 + $0x230] sm:$0xff]  ;;  %v2763_v8 = vpack.c.bf16 %v1341_v6, %v1334_v5  ;;  %v1310_v5 = vld [vmem:[%s4260_s3 + $0x258] sm:$0xff] }
 0x3ea   : > { %2708 = vmatprep.subr.bf16.mxu0 %v2707_v16  ;;  %v1317_v6 = vld [vmem:[%s4260_s3 + $0x290] sm:$0xff] }
 0x3ed   : > { %2710 = vmatpush3.bf16.msra.mxu0 %v2707_v16  ;;  %v2757_v16 = vpack.c.bf16 %v1312_v15, %v1305_v14  ;;  %v1335_v14 = vld [vmem:[%s4260_s3 + $0x320] sm:$0xff]  ;;  %v1342_v15 = vld [vmem:[%s4260_s3 + $0x358] sm:$0xff] }
 0x3ee   : > { %2712 = vmatprep.subr.bf16.mxu0 %v2711_v19 }
 0x3f1   : > { %2714 = vmatpush3.bf16.msra.mxu0 %v2711_v19  ;;  %v2759_v19 = vpack.c.bf16 %v1327_v18, %v1320_v17  ;;  %v1240_v17 = vld [vmem:[%s4260_s3 + $0x28] sm:$0xff]  ;;  %v1247_v18 = vld [vmem:[%s4260_s3 + $0x60] sm:$0xff] }
 0x3f2   : > { %2716 = vmatprep.subr.bf16.mxu0 %v2715_v22 }
 0x3f5   : > { %2718 = vmatpush3.bf16.msra.mxu0 %v2715_v22  ;;  %v2761_v22 = vpack.c.bf16 %v1326_v21, %v1319_v20  ;;  %v2799_v20 = vpack.c.bf16 %v1247_v18, %v1240_v17  ;;  %v1248_v21 = vld [vmem:[%s4260_s3 + $0x68] sm:$0xff] }
 0x3f6   : > { %2720 = vmatprep.subr.bf16.mxu0 %v2719_v25  ;;  %v1332_v17 = vld [vmem:[%s4260_s3 + $0x308] sm:$0xff] }
 0x3f9   : > { %2722 = vmatpush3.bf16.msra.mxu0 %v2719_v25 }
 0x3fa   : > { %2724 = vmatprep.subr.bf16.mxu0 %v2723_v28 }
 0x3fd   : > { %2726 = vmatpush3.bf16.msra.mxu0 %v2723_v28  ;;  %v1244_v28 = vld [vmem:[%s4260_s3 + $0x48] sm:$0xff] }
 0x3fe   : > { %2728 = vmatprep.subr.bf16.mxu0 %v2727_v31 }
 0x401   : > { %2730 = vmatpush3.bf16.msra.mxu0 %v2727_v31  ;;  %v1259_v31 = vld [vmem:[%s4260_s3 + $0xc0] sm:$0xff] }
 0x402   : > { %2732 = vmatprep.subr.bf16.mxu0 %v2731_v41 }
 0x405   : > { %2734 = vmatpush3.bf16.msra.mxu0 %v2731_v41 }
 0x406   : > { %2768 = vmatprep.subr.bf16.mxu0 %v2767_v49  ;;  %v1286_v49 = vld [vmem:[%s4260_s3 + $0x198] sm:$0xff] }
 0x407   : > { %v2781_v52 = vpack.c.bf16 %v1286_v49, %v1279_v48  ;;  %v1267_v48 = vld [vmem:[%s4260_s3 + $0x100] sm:$0xff]  ;;  %v1274_v49 = vld [vmem:[%s4260_s3 + $0x138] sm:$0xff] }
 0x408   : > { %v2809_v55 = vpack.c.bf16 %v1274_v49, %v1267_v48 }
 0x4bb   : > { %v2337_v33 = vpop.f32.mrb[10].mxu0 }
 0x4bc   : > { %v1040_v34 = vadd.f32 %v2337_v33, %v967_v32  ;;  %v1034_v35 = vpop.f32.mrb[11].mxu0  ;;  %v2769_v33 = vpack.c.bf16 %v1244_v28, %v1237_v27  ;;  %v1246_v27 = vld [vmem:[%s4260_s3 + $0x58] sm:$0xff] }
 0x4bd   : > { %v1035_v36 = vadd.f32 %v1034_v35, %v967_v32  ;;  %v2771_v35 = vpack.c.bf16 %v1259_v31, %v1252_v30  ;;  %v1261_v31 = vld [vmem:[%s4260_s3 + $0xd0] sm:$0xff] }
 0x4be   : > { %v1044_v38 = vmax.f32 %v1040_v34, 0.0 }
 0x4bf   : > { %v1043_v37 = vmax.f32 %v1035_v36, 0.0  ;;  %v1251_v36 = vld [vmem:[%s4260_s3 + $0x80] sm:$0xff] }
 0x4c1   : > { %2370 = vmatprep.mubr.f32.mxu1 %v1043_v37  ;;  %v1258_v37 = vld [vmem:[%s4260_s3 + $0xb8] sm:$0xff] }
 0x4c2   : > { %2371 = vmatmul.mubr.f32.vlgmr.msra.gmra.mrb[10].mxu1 %v1044_v38  ;;  %v1266_v38 = vld [vmem:[%s4260_s3 + $0xf8] sm:$0xff]  ;;  %v2773_v40 = vpack.c.bf16 %v1258_v37, %v1251_v36  ;;  %v1253_v37 = vld [vmem:[%s4260_s3 + $0x90] sm:$0xff] }
 0x4c3   : > { %2738 = vmatpush1.bf16.msra.mxu1 %v2737_v50  ;;  %v2775_v41 = vpack.c.bf16 %v1273_v39, %v1266_v38  ;;  %v1294_v50 = vld [vmem:[%s4260_s3 + $0x1d8] sm:$0xff]  ;;  %v1260_v38 = vld [vmem:[%s4260_s3 + $0xc8] sm:$0xff] }
 0x4c4   : > { %2740 = vmatprep.subr.bf16.mxu1 %v2739_v53  ;;  %v2783_v53 = vpack.c.bf16 %v1301_v51, %v1294_v50  ;;  %v2805_v45 = vpack.c.bf16 %v1260_v38, %v1253_v37  ;;  %v1282_v50 = vld [vmem:[%s4260_s3 + $0x178] sm:$0xff]  ;;  %v2839_v51 = vpack.c.bf16 %v1276_v44, %v1269_v43  ;;  %v1941_v38 = vld [vmem:[%s4261_s4 + $0x7] ss:$8 sm:$0x70] }
 0x4c5   : > { %v1940_v37 = vld [vmem:[%s4261_s4 + $0x7] ss:$8 sm:$0xf] }
 0x4c7   : > { %2742 = vmatpush1.bf16.msra.mxu1 %v2741_v56  ;;  %v1308_v56 = vld [vmem:[%s4260_s3 + $0x248] sm:$0xff] }
 0x4c8   : > { %2744 = vmatprep.subr.bf16.mxu1 %v2743_v59  ;;  %v2787_v59 = vpack.c.bf16 %v1315_v57, %v1308_v56 }
 0x4cb   : > { %2746 = vmatpush1.bf16.msra.mxu1 %v2745_v62  ;;  %v1322_v62 = vld [vmem:[%s4260_s3 + $0x2b8] sm:$0xff] }
 0x4cc   : > { %2748 = vmatprep.subr.bf16.mxu1 %v2747_v1  ;;  %v2791_v1 = vpack.c.bf16 %v1329_v63, %v1322_v62  ;;  %v1297_v62 = vld [vmem:[%s4260_s3 + $0x1f0] sm:$0xff]  ;;  %v1304_v63 = vld [vmem:[%s4260_s3 + $0x228] sm:$0xff] }
 0x4cf   : > { %2750 = vmatpush1.bf16.msra.mxu1 %v2749_v4  ;;  %v2793_v4 = vpack.c.bf16 %v1328_v3, %v1321_v2  ;;  %v2847_v2 = vpack.c.bf16 %v1304_v63, %v1297_v62  ;;  %v1295_v3 = vld [vmem:[%s4260_s3 + $0x1e0] sm:$0xff] }
 0x4d0   : > { %2752 = vmatprep.subr.bf16.mxu1 %v2751_v7  ;;  %v1336_v7 = vld [vmem:[%s4260_s3 + $0x328] sm:$0xff] }
 0x4d1   : > { %v2795_v12 = vpack.c.bf16 %v1343_v9, %v1336_v7  ;;  %v1311_v7 = vld [vmem:[%s4260_s3 + $0x260] sm:$0xff] }
 0x4d3   : > { %2754 = vmatpush1.bf16.msra.mxu1 %v2753_v10  ;;  %v1333_v10 = vld [vmem:[%s4260_s3 + $0x310] sm:$0xff] }
 0x4d4   : > { %2756 = vmatprep.subr.bf16.mxu1 %v2755_v13  ;;  %v2765_v13 = vpack.c.bf16 %v1340_v11, %v1333_v10  ;;  %v2819_v10 = vpack.c.bf16 %v1317_v6, %v1310_v5 }
 0x4d7   : > { %2758 = vmatpush1.bf16.msra.mxu1 %v2757_v16  ;;  %v2797_v16 = vpack.c.bf16 %v1342_v15, %v1335_v14  ;;  %v1324_v14 = vld [vmem:[%s4260_s3 + $0x2c8] sm:$0xff]  ;;  %v1331_v15 = vld [vmem:[%s4260_s3 + $0x300] sm:$0xff] }
 0x4d8   : > { %2760 = vmatprep.subr.bf16.mxu1 %v2759_v19  ;;  %v1241_v19 = vld [vmem:[%s4260_s3 + $0x30] sm:$0xff] }
 0x4db   : > { %2762 = vmatpush1.bf16.msra.mxu1 %v2761_v22  ;;  %v2831_v22 = vpack.c.bf16 %v1248_v21, %v1241_v19  ;;  %v2823_v19 = vpack.c.bf16 %v1331_v15, %v1324_v14  ;;  %v1323_v21 = vld [vmem:[%s4260_s3 + $0x2c0] sm:$0xff] }
 0x4dc   : > { %2764 = vmatprep.subr.bf16.mxu1 %v2763_v8  ;;  %v1318_v8 = vld [vmem:[%s4260_s3 + $0x298] sm:$0xff] }
 0x4dd   : > { %v2851_v11 = vpack.c.bf16 %v1318_v8, %v1311_v7 }
 0x4df   : > { %2766 = vmatpush1.bf16.msra.mxu1 %v2765_v13  ;;  %v1316_v13 = vld [vmem:[%s4260_s3 + $0x288] sm:$0xff] }
 0x4e0   : > { %2800 = vmatprep.subr.bf16.mxu1 %v2799_v20 }
 0x595   : > { %v2372_v24 = vpop.f32.mrb[10].mxu1 }
 0x596   : > { %v1135_v25 = vadd.f32 %v2372_v24, %v1062_v23  ;;  %v1129_v26 = vpop.f32.mrb[11].mxu1  ;;  %v1157_v24 = vld [vmem:[%s4261_s4 + $0x6] ss:$0 sm:$0xff] }
 0x597   : > { %v1130_v29 = vadd.f32 %v1129_v26, %v1062_v23  ;;  %v3047_v23 = vmov 0.0   ;;  %v1239_v26 = vld [vmem:[%s4260_s3 + $0x20] sm:$0xff] }
 0x598   : > { %v1139_v34 = vmax.f32 %v1135_v25, 0.0  ;;  %1451 = vmatprep.mubr.f32.mxu1 %v3047_v23 }
 0x599   : > { %v1138_v32 = vmax.f32 %v1130_v29, 0.0  ;;  %v1254_v29 = vld [vmem:[%s4260_s3 + $0x98] sm:$0xff] }
 0x59a   : > { %v2803_v39 = vpack.c.bf16 %v1261_v31, %v1254_v29  ;;  %v1337_v31 = vld [vmem:[%s4260_s3 + $0x330] sm:$0xff] }
 0x59b   : > { %2405 = vmatprep.mubr.f32.mxu0 %v1138_v32  ;;  %v1255_v32 = vld [vmem:[%s4260_s3 + $0xa0] sm:$0xff] }
 0x59c   : > { %2406 = vmatmul.mubr.f32.vlgmr.msra.gmra.mrb[12].mxu0 %v1139_v34  ;;  %v2801_v34 = vpack.c.bf16 %v1246_v27, %v1239_v26  ;;  %v1339_v26 = vld [vmem:[%s4260_s3 + $0x340] sm:$0xff]  ;;  %v1346_v27 = vld [vmem:[%s4260_s3 + $0x378] sm:$0xff] }
 0x59d   : > { %2770 = vmatpush1.bf16.msra.mxu0 %v2769_v33  ;;  %1528 = vmatprep.mubr.f32.mxu0 %v3047_v23  ;;  %v1262_v33 = vld [vmem:[%s4260_s3 + $0xd8] sm:$0xff] }
 0x59e   : > { %2772 = vmatprep.subr.bf16.mxu0 %v2771_v35 }
 0x5a1   : > { %2774 = vmatpush1.bf16.msra.mxu0 %v2773_v40  ;;  %v2835_v40 = vpack.c.bf16 %v1262_v33, %v1255_v32  ;;  %v1344_v32 = vld [vmem:[%s4260_s3 + $0x368] sm:$0xff] }
 0x5a2   : > { %2776 = vmatprep.subr.bf16.mxu0 %v2775_v41  ;;  %v1268_v41 = vld [vmem:[%s4260_s3 + $0x108] sm:$0xff]  ;;  %v2829_v33 = vpack.c.bf16 %v1344_v32, %v1337_v31 }
 0x5a5   : > { %2778 = vmatpush1.bf16.msra.mxu0 %v2777_v46 }
 0x5a6   : > { %2780 = vmatprep.subr.bf16.mxu0 %v2779_v47  ;;  %v2807_v47 = vpack.c.bf16 %v1275_v42, %v1268_v41 }
 0x5a9   : > { %2782 = vmatpush1.bf16.msra.mxu0 %v2781_v52  ;;  %v1289_v52 = vld [vmem:[%s4260_s3 + $0x1b0] sm:$0xff] }
 0x5aa   : > { %2784 = vmatprep.subr.bf16.mxu0 %v2783_v53  ;;  %v1283_v53 = vld [vmem:[%s4260_s3 + $0x180] sm:$0xff]  ;;  %v2811_v56 = vpack.c.bf16 %v1289_v52, %v1282_v50 }
 0x5ab   : > { %v2843_v57 = vpack.c.bf16 %v1290_v54, %v1283_v53 }
 0x5ad   : > { %2786 = vmatpush1.bf16.msra.mxu0 %v2785_v58  ;;  %v1281_v58 = vld [vmem:[%s4260_s3 + $0x170] sm:$0xff] }
 0x5ae   : > { %2788 = vmatprep.subr.bf16.mxu0 %v2787_v59  ;;  %v1288_v59 = vld [vmem:[%s4260_s3 + $0x1a8] sm:$0xff] }
 0x5b1   : > { %2790 = vmatpush1.bf16.msra.mxu0 %v2789_v0  ;;  %v2813_v0 = vpack.c.bf16 %v1288_v59, %v1281_v58 }
 0x5b2   : > { %2792 = vmatprep.subr.bf16.mxu0 %v2791_v1  ;;  %v2815_v1 = vpack.c.bf16 %v1303_v61, %v1296_v60 }
 0x5b5   : > { %2794 = vmatpush1.bf16.msra.mxu0 %v2793_v4  ;;  %v1302_v4 = vld [vmem:[%s4260_s3 + $0x218] sm:$0xff] }
 0x5b6   : > { %2796 = vmatprep.subr.bf16.mxu0 %v2795_v12  ;;  %v2817_v9 = vpack.c.bf16 %v1302_v4, %v1295_v3  ;;  %v1309_v12 = vld [vmem:[%s4260_s3 + $0x250] sm:$0xff] }
 0x5b7   : > { %v2821_v18 = vpack.c.bf16 %v1316_v13, %v1309_v12 }
 0x5b9   : > { %2798 = vmatpush1.bf16.msra.mxu0 %v2797_v16  ;;  %v1325_v16 = vld [vmem:[%s4260_s3 + $0x2d0] sm:$0xff] }
 0x5ba   : > { %2832 = vmatprep.subr.bf16.mxu0 %v2831_v22  ;;  %v2855_v20 = vpack.c.bf16 %v1332_v17, %v1325_v16 }
 0x66f   : > { %v2407_v25 = vpop.f32.mrb[12].mxu0 }
 0x670   : > { %v1224_v28 = vpop.f32.mrb[13].mxu0  ;;  %v1230_v35 = vadd.f32 %v2407_v25, %v1157_v24  ;;  %v1345_v25 = vld [vmem:[%s4260_s3 + $0x370] sm:$0xff] }
 0x671   : > { %v1225_v30 = vadd.f32 %v1224_v28, %v1157_v24  ;;  %v1338_v24 = vld [vmem:[%s4260_s3 + $0x338] sm:$0xff] }
 0x672   : > { %v4055_v46 = vmax.f32 %v1230_v35, 0.0  ;;  %v2827_v29 = vpack.c.bf16 %v1345_v25, %v1338_v24 }
 0x673   : > { %v4033_v36 = vmax.f32 %v1225_v30, 0.0  ;;  %v2859_v30 = vpack.c.bf16 %v1346_v27, %v1339_v26 }
 0x675   : > { %1452 = vmatmul.mubr.f32.vlgmr.msra.gmra.mrb[12].mxu1 %v4033_v36  ;;  %1529 = vmatmul.mubr.f32.vlgmr.msra.gmra.mrb[14].mxu0 %v4033_v36 }
 0x676   : > { %2802 = vmatpush1.bf16.msra.mxu1 %v2801_v34  ;;  %2834 = vmatpush3.bf16.msra.mxu0 %v2831_v22  ;;  %v1330_v22 = vld [vmem:[%s4260_s3 + $0x2f8] sm:$0xff]  ;;  %v1352_v34 = vlaneseq }
 0x677   : > { %1457 = vmatprep.mubr.f32.mxu1 %v3047_v23  ;;  %1534 = vmatprep.mubr.f32.mxu0 %v3047_v23  ;;  %v2825_v28 = vpack.c.bf16 %v1330_v22, %v1323_v21 }
 0x678   : > { %2804 = vmatprep.subr.bf16.mxu1 %v2803_v39  ;;  %2836 = vmatprep.subr.bf16.mxu0 %v2835_v40  ;;  %v4163_v35 = vshrl.u32 %v1352_v34, 7  ;;  %v4171_v39 = vor.u32 %v1941_v38, %v1940_v37 }
 0x679   : > { %1458 = vmatmul.mubr.f32.gmra.mrb[14].mxu1 %v4055_v46  ;;  %1535 = vmatmul.mubr.f32.gmra.mrb[16].mxu0 %v4055_v46 }
 0x67a   : > { %2806 = vmatpush1.bf16.msra.mxu1 %v2805_v45  ;;  %2838 = vmatpush3.bf16.msra.mxu0 %v2835_v40  ;;  %v1362_v40 = vsub.s32 2, %v4163_v35  ;;  %v1366_v41 = vsub.s32 3, %v4163_v35  ;;  %v1370_v31 = vsub.s32 4, %v4163_v35  ;;  %v1378_v32 = vsub.s32 6, %v4163_v35 }
 0x67b   : > { %2440 = vmatprep.mubr.f32.mxu0 %v4033_v36  ;;  %2808 = vmatprep.subr.bf16.mxu1 %v2807_v47 }
 0x67c   : > { %2840 = vmatprep.subr.bf16.mxu0 %v2839_v51  ;;  %1605 = vmatprep.mubr.f32.mxu1 %v3047_v23  ;;  %v1363_v43 = vrot.slane %v4171_v39, %v1362_v40  ;;  %v1367_v45 = vrot.slane %v4171_v39, %v1366_v41  ;;  %v1371_v34 = vrot.slane %v4171_v39, %v1370_v31 }
 0x67d   : > { %v1379_v37 = vrot.slane %v4171_v39, %v1378_v32 }
 0x67e   : > { %2810 = vmatpush1.bf16.msra.mxu1 %v2809_v55  ;;  %2842 = vmatpush3.bf16.msra.mxu0 %v2839_v51 }
 0x67f   : > { %2812 = vmatprep.subr.bf16.mxu1 %v2811_v56  ;;  %2844 = vmatprep.subr.bf16.mxu0 %v2843_v57 }
 0x682   : > { %2814 = vmatpush1.bf16.msra.mxu1 %v2813_v0  ;;  %2846 = vmatpush3.bf16.msra.mxu0 %v2843_v57 }
 0x683   : > { %2816 = vmatprep.subr.bf16.mxu1 %v2815_v1  ;;  %2848 = vmatprep.subr.bf16.mxu0 %v2847_v2 }
 0x686   : > { %2818 = vmatpush1.bf16.msra.mxu1 %v2817_v9  ;;  %2850 = vmatpush3.bf16.msra.mxu0 %v2847_v2 }
 0x687   : > { %2820 = vmatprep.subr.bf16.mxu1 %v2819_v10  ;;  %2852 = vmatprep.subr.bf16.mxu0 %v2851_v11 }
 0x68a   : > { %2822 = vmatpush1.bf16.msra.mxu1 %v2821_v18  ;;  %2854 = vmatpush3.bf16.msra.mxu0 %v2851_v11 }
 0x68b   : > { %2824 = vmatprep.subr.bf16.mxu1 %v2823_v19  ;;  %2856 = vmatprep.subr.bf16.mxu0 %v2855_v20 }
 0x68e   : > { %2826 = vmatpush1.bf16.msra.mxu1 %v2825_v28  ;;  %2858 = vmatpush3.bf16.msra.mxu0 %v2855_v20 }
 0x68f   : > { %2828 = vmatprep.subr.bf16.mxu1 %v2827_v29  ;;  %2860 = vmatprep.subr.bf16.mxu0 %v2859_v30 }
 0x692   : > { %2830 = vmatpush1.bf16.msra.mxu1 %v2829_v33  ;;  %2862 = vmatpush3.bf16.msra.mxu0 %v2859_v30  ;;  %v1374_v33 = vsub.s32 5, %v4163_v35 }
 0x694   : > { %v1375_v38 = vrot.slane %v4171_v39, %v1374_v33 }
 0x695   : > { %1606 = vmatmul.mubr.f32.vlgmr.msra.gmra.mrb[16].mxu1 %v4033_v36  ;;  %2441 = vmatmul.mubr.f32.vlgmr.msra.gmra.mrb[18].mxu0 %v4055_v46  ;;  %v1354_v36 = vsub.s32 0, %v4163_v35 }
 0x696   : > { %1611 = vmatprep.mubr.f32.mxu1 %v3047_v23  ;;  %v1358_v23 = vsub.s32 1, %v4163_v35 }
 0x697   : > { %v1355_v42 = vrot.slane %v4171_v39, %v1354_v36 }
 0x698   : > { %v1359_v44 = vrot.slane %v4171_v39, %v1358_v23 }
 0x699   : > { %1612 = vmatmul.mubr.f32.gmra.mrb[18].mxu1 %v4055_v46 }
 0x748   : > { %v1453_v46 = vpop.f32.mrb[12].mxu1  ;;  %v1530_v47 = vpop.f32.mrb[14].mxu0 }
 0x749   : > { %v1454_v48 = vadd.f32 %v1453_v46, %v1355_v42  ;;  %v1531_v49 = vadd.f32 %v1530_v47, %v1363_v43  ;;  %v1455_v50 = vpop.f32.mrb[13].mxu1  ;;  %v1532_v51 = vpop.f32.mrb[15].mxu0 }
 0x74a   : > { %v1456_v52 = vadd.f32 %v1455_v50, %v1359_v44  ;;  %v1533_v53 = vadd.f32 %v1532_v51, %v1367_v45 }
 0x74b   : > { %v1693_v54 = vmul.f32 0.5, %v1454_v48  ;;  %v1695_v55 = vmul.f32 0.5, %v1531_v49 }
 0x74c   : > { %v1694_v56 = vmul.f32 0.5, %v1456_v52  ;;  %v1696_v57 = vmul.f32 0.5, %v1533_v53  ;;  %v1459_v58 = vpop.f32.mrb[14].mxu1  ;;  %v1536_v59 = vpop.f32.mrb[16].mxu0 }
 0x74d   : > { %2918 = vtanh.f32 %v1693_v54  ;;  %v1460_v60 = vadd.f32 %v1459_v58, %v1355_v42  ;;  %v1537_v61 = vadd.f32 %v1536_v59, %v1363_v43  ;;  %v1461_v62 = vpop.f32.mrb[15].mxu1  ;;  %v1538_v63 = vpop.f32.mrb[17].mxu0 }
 0x74e   : > { %2920 = vtanh.f32 %v1695_v55  ;;  %v1462_v0 = vadd.f32 %v1461_v62, %v1359_v44  ;;  %v1539_v1 = vadd.f32 %v1538_v63, %v1367_v45 }
 0x74f   : > { %2922 = vtanh.f32 %v1694_v56  ;;  %v1700_v2 = vmul.f32 0.5, %v1460_v60  ;;  %v1702_v3 = vmul.f32 0.5, %v1537_v61 }
 0x750   : > { %2924 = vtanh.f32 %v1696_v57  ;;  %v1701_v4 = vmul.f32 0.5, %v1462_v0  ;;  %v1703_v5 = vmul.f32 0.5, %v1539_v1 }
 0x751   : > { %2926 = vtanh.f32 %v1700_v2 }
 0x752   : > { %2928 = vtanh.f32 %v1702_v3 }
 0x753   : > { %2930 = vtanh.f32 %v1701_v4 }
 0x754   : > { %2932 = vtanh.f32 %v1703_v5 }
 0x757   : > { %v2919_v6 = vpop.eup %2918 }
 0x758   : > { %v2921_v7 = vpop.eup %2920  ;;  %v1721_v8 = vadd.f32 1.0, %v2919_v6 }
 0x759   : > { %v2923_v9 = vpop.eup %2922  ;;  %v1723_v10 = vadd.f32 1.0, %v2921_v7 }
 0x75a   : > { %v2925_v11 = vpop.eup %2924  ;;  %v1735_v12 = vmul.f32 0.5, %v1721_v8  ;;  %v1722_v13 = vadd.f32 1.0, %v2923_v9 }
 0x75b   : > { %v2927_v14 = vpop.eup %2926  ;;  %v1737_v15 = vmul.f32 0.5, %v1723_v10  ;;  %v1724_v16 = vadd.f32 1.0, %v2925_v11 }
 0x75c   : > { %v2929_v17 = vpop.eup %2928  ;;  %1749 = vst [vmem:[%s4183_s12] sm:$0xff] %v1735_v12  ;;  %v1736_v18 = vmul.f32 0.5, %v1722_v13  ;;  %v1728_v19 = vadd.f32 1.0, %v2927_v14 }
 0x75d   : > { %v2931_v20 = vpop.eup %2930  ;;  %1751 = vst [vmem:[%s4183_s12 + $0x10] sm:$0xff] %v1737_v15  ;;  %v1738_v21 = vmul.f32 0.5, %v1724_v16  ;;  %v1730_v22 = vadd.f32 1.0, %v2929_v17 }
 0x75e   : > { %v2933_v24 = vpop.eup %2932  ;;  %1750 = vst [vmem:[%s4183_s12 + $0x8] sm:$0xff] %v1736_v18  ;;  %v1742_v25 = vmul.f32 0.5, %v1728_v19  ;;  %v1729_v26 = vadd.f32 1.0, %v2931_v20 }
 0x75f   : > { %1752 = vst [vmem:[%s4183_s12 + $0x18] sm:$0xff] %v1738_v21  ;;  %v1744_v27 = vmul.f32 0.5, %v1730_v22  ;;  %v1731_v28 = vadd.f32 1.0, %v2933_v24 }
 0x760   : > { %1756 = vst [vmem:[%s4183_s12 + $0x38] sm:$0xff] %v1742_v25  ;;  %v1743_v29 = vmul.f32 0.5, %v1729_v26 }
 0x761   : > { %1758 = vst [vmem:[%s4183_s12 + $0x48] sm:$0xff] %v1744_v27  ;;  %v1745_v30 = vmul.f32 0.5, %v1731_v28 }
 0x762   : > { %1757 = vst [vmem:[%s4183_s12 + $0x40] sm:$0xff] %v1743_v29 }
 0x763   : > { %1759 = vst [vmem:[%s4183_s12 + $0x50] sm:$0xff] %v1745_v30 }
 0x768   : > { %v1607_v36 = vpop.f32.mrb[16].mxu1  ;;  %v2442_v40 = vpop.f32.mrb[18].mxu0 }
 0x769   : > { %v1608_v23 = vadd.f32 %v1607_v36, %v1371_v34  ;;  %v1690_v41 = vadd.f32 %v2442_v40, %v1379_v37  ;;  %v1609_v42 = vpop.f32.mrb[17].mxu1  ;;  %v1684_v43 = vpop.f32.mrb[19].mxu0 }
 0x76a   : > { %v1610_v44 = vadd.f32 %v1609_v42, %v1375_v38  ;;  %v1685_v45 = vadd.f32 %v1684_v43, %v1379_v37 }
 0x76b   : > { %v1697_v46 = vmul.f32 0.5, %v1608_v23  ;;  %v1706_v47 = vmul.f32 0.5, %v1690_v41 }
 0x76c   : > { %v1698_v48 = vmul.f32 0.5, %v1610_v44  ;;  %v1699_v49 = vmul.f32 0.5, %v1685_v45  ;;  %v1613_v35 = vpop.f32.mrb[18].mxu1 }
 0x76d   : > { %2934 = vtanh.f32 %v1697_v46  ;;  %v1614_v50 = vadd.f32 %v1613_v35, %v1371_v34  ;;  %v1615_v51 = vpop.f32.mrb[19].mxu1 }
 0x76e   : > { %2936 = vtanh.f32 %v1706_v47  ;;  %v1616_v52 = vadd.f32 %v1615_v51, %v1375_v38 }
 0x76f   : > { %2938 = vtanh.f32 %v1698_v48  ;;  %v1704_v39 = vmul.f32 0.5, %v1614_v50 }
 0x770   : > { %2940 = vtanh.f32 %v1699_v49  ;;  %v1705_v53 = vmul.f32 0.5, %v1616_v52 }
 0x771   : > { %2942 = vtanh.f32 %v1704_v39 }
 0x772   : > { %2944 = vtanh.f32 %v1705_v53 }
 0x777   : > { %v2935_v54 = vpop.eup %2934 }
 0x778   : > { %v2937_v55 = vpop.eup %2936  ;;  %v1725_v56 = vadd.f32 1.0, %v2935_v54 }
 0x779   : > { %v2939_v57 = vpop.eup %2938  ;;  %v1734_v58 = vadd.f32 1.0, %v2937_v55 }
 0x77a   : > { %v2941_v59 = vpop.eup %2940  ;;  %v1739_v60 = vmul.f32 0.5, %v1725_v56  ;;  %v1726_v61 = vadd.f32 1.0, %v2939_v57 }
 0x77b   : > { %v2943_v62 = vpop.eup %2942  ;;  %v1748_v63 = vmul.f32 0.5, %v1734_v58  ;;  %v1727_v0 = vadd.f32 1.0, %v2941_v59 }
 0x77c   : > { %v2945_v1 = vpop.eup %2944  ;;  %1753 = vst [vmem:[%s4183_s12 + $0x20] sm:$0xff] %v1739_v60  ;;  %v1740_v2 = vmul.f32 0.5, %v1726_v61  ;;  %v1732_v3 = vadd.f32 1.0, %v2943_v62 }
 0x77d   : > { %1762 = vst.msk [vmem:[%s4183_s12 + $0x68] sm:$0xff] %vm359_vm0, %v1748_v63  ;;  %v1741_v4 = vmul.f32 0.5, %v1727_v0  ;;  %v1733_v5 = vadd.f32 1.0, %v2945_v1 }
 0x77e   : > { %1754 = vst [vmem:[%s4183_s12 + $0x28] sm:$0xff] %v1740_v2  ;;  %v1746_v6 = vmul.f32 0.5, %v1732_v3 }
 0x77f   : > { %1755 = vst.msk [vmem:[%s4183_s12 + $0x30] sm:$0xff] %vm359_vm0, %v1741_v4  ;;  %v1747_v7 = vmul.f32 0.5, %v1733_v5 }
 0x780   : > { %1760 = vst [vmem:[%s4183_s12 + $0x58] sm:$0xff] %v1746_v6 }
 0x781   : > { %1761 = vst [vmem:[%s4183_s12 + $0x60] sm:$0xff] %v1747_v7 }
 0x782   : > { %2989 = shalt.err (!%p2986_p1)
}
 0x783   : > { %s2990_s28 = scalar_lea.hbm %s4208_s7, 1792  ;;  %s2994_s25 = scalar_lea.hbm %s4262_s5, 7168 }
 0x784   : > { %p2991_p3 = scmp.ne.s32.totalorder %s4208_s7, %s2990_s28  ;;  %p2995_p0 = scmp.lt.u32.totalorder %s4208_s7, %s4262_s5 }
 0x785   : > { %p2996_p2 = scmp.lt.u32.totalorder %s2994_s25, %s2990_s28  ;;  %p2998_p6 = scmp.lt.u32.totalorder %s2990_s28, %s4208_s7 }
 0x786   : > { %p2992_p4 = pnand %p2991_p3, %p4268_p10 }
 0x787   : > { %p2997_p7 = por %p2996_p2, %p2995_p0 }
 0x788   : > { %p2993_p5 = pneg %p2992_p4 }
 0x789   : > { %p2999_p11 = por %p2998_p6, %p2997_p7 }
 0x78b   : > { %p3000_p12 = pnand %p2999_p11, %p2993_p5 }
 0x78d   : > { %3003 = shalt.err (!%p3000_p12)
}
 0x78e   : > { %s3049_s23 = smov 896   ;;  %s3050_s15 = smov 56  }
 0x78f   : > { %2869 = dma.vmem_to_hbm [thread:$0]  (%p4268_p10), %s4212_s14, 1792, %s4208_s7, %s1764_s6, %s3049_s23, %s3049_s23, %s3050_s15  }
 0x790 PF: > { %p2880_p8 = scmp.ge.s32.totalorder %s3042_s21, 2  ;;  %s1793_s22 = sand.u32 1, %s3030_s18  }
 0x791   : > { %p4269_p9 = scmp.ne.s32.totalorder %s4266_s30, 0  ;;  %s1794_s8 = scalar_lea.sflag [#allocation4], %s1793_s22 }
 0x793   : > { %p2876_p13 = pnand %p2880_p8, %p4269_p9 }
 0x795   : > { %3025 = dma.done.wait (!%p2876_p13), %s1794_s8, 1792  }
 0x796   : > { %3027 = vsyncadd (!%p2876_p13), %s1794_s8, 4294965504  ;;  %p18_p1 = scmp.ge.s32.totalorder %s3106_s24, 6   ;;  %s4270_s18 = smov %s3034_s19 }
 0x797   : > { %s4271_s19 = smov %s3038_s20  ;;  %s4272_s20 = smov %s3118_s27 }
 0x798   : > { %s4273_s21 = smov %s3106_s24  ;;  %20 = sbr.rel (!%p18_p1) target bundleno = 5 (0x5), region = 91 }
 0x79f   :  { %1799 = vsyncpa [#allocation3], 1 }
 0x7a0   :  { %1801 = vsyncpa [#allocation3 + $0x1], 1 }
 0x7a1   :  { %1802 = vsyncpa [#allocation4], 1 }
 0x7a2   :  { %1804 = vsyncpa [#allocation4 + $0x1], 1 }

</bundles_post_ra>
